<compile_context>
chip_gen: v7x
topology: tpu7x:2x2x1
jax: 0.10.0
libtpu: 0.0.40
codegen_flags: <defaults>
</compile_context>

<pallas_src>
import jax
import jax.numpy as jnp
import numpy as np
from jax import lax
from jax.experimental import pallas as pl
from jax.experimental.pallas import tpu as pltpu

LANE = 128  # each GRU gate gets its own 128-lane slab


# ----------------------------------------------------------------------------
# Pallas kernel: full GRU recurrence + MLP head, everything resident in VMEM.
# ----------------------------------------------------------------------------
def _gru_mlp_kernel(x_ref,      # (T*B, IP)          f32  time-major, feature-padded input
                    w32_ref,    # (IP + 2*128, 384)   f32  [Wih^T | W1^T | W2^T] row-packed
                    whh_ref,    # (128, 384)          bf16 gate-padded Whh^T (rows >= H zero)
                    b_ref,      # (1, 6*128)          f32  [b_fold(384)|bhh_n|b1|b2] lane-packed
                    out_ref):   # (B, 1)              f32
    TB, IP = x_ref.shape
    B = out_ref.shape[0]
    T = TB // B
    Hp = whh_ref.shape[1] // 3            # 128 (padded hidden slab)
    f32 = jnp.float32

    # ---- One-time loads / static, lane- & sublane-aligned slices (hoisted). ----
    wih    = w32_ref[0:IP, :]                     # (IP, 3*Hp)  f32
    w1     = w32_ref[IP:IP + Hp, 0:Hp]            # (Hp, Hp)    f32 (cols >= 10 zero)
    w2     = w32_ref[IP + Hp:IP + 2 * Hp, 0:Hp]   # (Hp, Hp)    f32 (only col 0 used)
    whh_rz = whh_ref[:, 0:2 * Hp]                 # (Hp, 2*Hp)  bf16
    whh_n  = whh_ref[:, 2 * Hp:3 * Hp]            # (Hp, Hp)    bf16
    b_fold = b_ref[:, 0:3 * Hp]                   # (1, 3*Hp)   r,z: b_ih+b_hh ; n: b_ih
    b1     = b_ref[:, 4 * Hp:5 * Hp]              # (1, Hp)
    b2     = b_ref[:, 5 * Hp:5 * Hp + 1]          # (1, 1)
    bhh_n  = jnp.broadcast_to(b_ref[:, 3 * Hp:4 * Hp], (B, Hp))   # hoisted broadcast

    # ---- Hoisted input projection (off the serial chain): one dot for all
    #      timesteps, with the per-gate folded biases already included.
    gi_all = jnp.dot(x_ref[...], wih, preferred_element_type=f32) + b_fold  # (T*B, 3*Hp)

    # ---- Serial recurrence.  T is small & static: fully unroll so the scheduler
    #      can overlap step t+1's MXU pushes with step t's EUP/VALU tail.
    h = jnp.zeros((B, Hp), f32)
    for t in range(T):
        gi_t = gi_all[t * B:(t + 1) * B, :]                       # static row slice
        h_b = h.astype(jnp.bfloat16)                              # bf16 MXU LHS
        # Split recurrent matmul in dependency order: rz result pops first, so
        # sigmoid(r||z) starts while the n-gate pass is still in the MXU.
        gh_rz = jnp.dot(h_b, whh_rz, preferred_element_type=f32)  # (B, 2*Hp)
        gh_n  = jnp.dot(h_b, whh_n,  preferred_element_type=f32)  # (B, Hp)
        rz = jax.nn.sigmoid(gi_t[:, 0:2 * Hp] + gh_rz)            # one EUP push for r||z
        r = rz[:, 0:Hp]
        z = rz[:, Hp:2 * Hp]
        n = jnp.tanh(gi_t[:, 2 * Hp:3 * Hp] + r * (gh_n + bhh_n))
        h = n + z * (h - n)       # == (1 - z) * n + z * h
        # padded lanes (>= H) stay exactly 0: every padded weight/bias entry is
        # exactly 0, so there r=z=0.5, n=0, h_new = 0.5 * h_pad = 0.

    # ---- Head: Linear(H->10) -> ReLU -> Linear(10->1), padded to 128 lanes.
    y1 = jnp.maximum(jnp.dot(h, w1, preferred_element_type=f32) + b1, 0.0)   # (B, Hp)
    out = jnp.dot(y1, w2, preferred_element_type=f32)                        # (B, Hp); col 0 real
    out_ref[...] = (out[:, 0:1] + b2).astype(out_ref.dtype)


def _rnn_forward(x, w32, whh_bf, bias):
    """x: (B, T, I) float32 (batch_first, like the PyTorch module).
    w32 / whh_bf / bias must come from prepare_params()."""
    B, T, I = x.shape
    Hp = whh_bf.shape[1] // 3
    IP = w32.shape[0] - 2 * Hp
    # Time-major 2-D layout + zero-pad input features: done in XLA (free in HBM),
    # so the kernel needs no reshapes and gi_all stays 2-D.
    x_tm = jnp.transpose(x, (1, 0, 2)).reshape(T * B, I)
    x_tm = jnp.pad(x_tm, ((0, 0), (0, IP - I)))
    vmem = pl.BlockSpec(memory_space=pltpu.MemorySpace.VMEM)
    return pl.pallas_call(
        _gru_mlp_kernel,
        out_shape=jax.ShapeDtypeStruct((B, 1), jnp.float32),
        in_specs=[vmem, vmem, vmem, vmem],
        out_specs=vmem,
    )(x_tm, w32, whh_bf, bias)


rnn_forward = jax.jit(_rnn_forward)


# ----------------------------------------------------------------------------
# One-time parameter preparation (outside jit): transpose, gate-pad to 128-lane
# slabs, fold biases, pack into 3 consolidated operand slabs.
# ----------------------------------------------------------------------------
def prepare_params(w_ih, w_hh, b_ih, b_hh, w1, b1, w2, b2):
    w_ih = np.asarray(w_ih, np.float32)   # (3H, I)
    w_hh = np.asarray(w_hh, np.float32)   # (3H, H)
    b_ih = np.asarray(b_ih, np.float32)   # (3H,)
    b_hh = np.asarray(b_hh, np.float32)   # (3H,)
    w1 = np.asarray(w1, np.float32)       # (10, H)
    b1 = np.asarray(b1, np.float32)       # (10,)
    w2 = np.asarray(w2, np.float32)       # (1, 10)
    b2 = np.asarray(b2, np.float32)       # (1,)

    H = w_hh.shape[1]
    I = w_ih.shape[1]
    D1 = w1.shape[0]
    assert H <= LANE and D1 <= LANE, "gate/head padding assumes sizes <= 128"
    Hp = LANE
    IP = ((I + 7) // 8) * 8               # sublane-aligned padded input width

    # f32 slab: rows [0:IP) Wih^T (gate-padded), [IP:IP+Hp) head W1^T, [IP+Hp:IP+2Hp) head W2^T.
    W32 = np.zeros((IP + 2 * Hp, 3 * Hp), np.float32)
    for g in range(3):                                 # PyTorch gate order: r, z, n
        W32[0:I, g * Hp:g * Hp + H] = w_ih[g * H:(g + 1) * H, :].T
    W32[IP:IP + H, 0:D1] = w1.T
    W32[IP + Hp:IP + Hp + D1, 0:1] = w2.T

    # bf16 recurrent-weight slab (on the serial chain -> bf16 MXU inputs).
    Whh = np.zeros((Hp, 3 * Hp), np.float32)
    for g in range(3):
        Whh[0:H, g * Hp:g * Hp + H] = w_hh[g * H:(g + 1) * H, :].T

    # Bias slab: [b_fold(r|z|n) | bhh_n | b1 | b2], lane-packed.  Padded entries exactly 0.
    bias = np.zeros((1, 6 * Hp), np.float32)
    bias[0, 0 * Hp:0 * Hp + H] = b_ih[0:H] + b_hh[0:H]              # r
    bias[0, 1 * Hp:1 * Hp + H] = b_ih[H:2 * H] + b_hh[H:2 * H]      # z
    bias[0, 2 * Hp:2 * Hp + H] = b_ih[2 * H:3 * H]                  # n (b_ih only)
    bias[0, 3 * Hp:3 * Hp + H] = b_hh[2 * H:3 * H]                  # n-gate b_hh
    bias[0, 4 * Hp:4 * Hp + D1] = b1
    bias[0, 5 * Hp] = b2[0]

    return (jnp.asarray(W32),
            jnp.asarray(Whh).astype(jnp.bfloat16),
            jnp.asarray(bias))


# ----------------------------------------------------------------------------
# Pure-JAX f32 reference (mirrors torch.nn.GRU + the Sequential head).
# ----------------------------------------------------------------------------
def rnn_reference(x, w_ih, w_hh, b_ih, b_hh, w1, b1, w2, b2):
    B, T, I = x.shape
    H = w_hh.shape[1]

    def step(h, x_t):
        gi = x_t @ w_ih.T + b_ih
        gh = h @ w_hh.T + b_hh
        r = jax.nn.sigmoid(gi[:, 0:H] + gh[:, 0:H])
        z = jax.nn.sigmoid(gi[:, H:2 * H] + gh[:, H:2 * H])
        n = jnp.tanh(gi[:, 2 * H:3 * H] + r * gh[:, 2 * H:3 * H])
        return (1.0 - z) * n + z * h, None

    h0 = jnp.zeros((B, H), jnp.float32)
    h_last, _ = lax.scan(step, h0, jnp.transpose(x, (1, 0, 2)))
    y1 = jnp.maximum(h_last @ w1.T + b1, 0.0)
    return y1 @ w2.T + b2


# ----------------------------------------------------------------------------
# Deterministic parameter initialization (PyTorch-style uniform(-k, k)).
# ----------------------------------------------------------------------------
def init_params(key, input_size=12, hidden_size=48):
    ks = jax.random.split(key, 8)
    kg = 1.0 / np.sqrt(hidden_size)
    k1 = 1.0 / np.sqrt(hidden_size)     # fan_in of head Linear 1 (= H, unidirectional)
    k2 = 1.0 / np.sqrt(10.0)            # fan_in of head Linear 2

    def u(k, shape, scale):
        return jax.random.uniform(k, shape, jnp.float32, minval=-scale, maxval=scale)

    w_ih = u(ks[0], (3 * hidden_size, input_size), kg)
    w_hh = u(ks[1], (3 * hidden_size, hidden_size), kg)
    b_ih = u(ks[2], (3 * hidden_size,), kg)
    b_hh = u(ks[3], (3 * hidden_size,), kg)
    w1 = u(ks[4], (10, hidden_size), k1)
    b1 = u(ks[5], (10,), k1)
    w2 = u(ks[6], (1, 10), k2)
    b2 = u(ks[7], (1,), k2)
    return (w_ih, w_hh, b_ih, b_hh, w1, b1, w2, b2)


if __name__ == "__main__":
    key = jax.random.PRNGKey(0)
    k_x, k_p = jax.random.split(key)

    B, T, I, H = 2, 8, 12, 48
    x = jax.random.normal(k_x, (B, T, I), jnp.float32)
    params = init_params(k_p, input_size=I, hidden_size=H)

    prepared = prepare_params(*params)     # once, outside the jitted forward

    out = rnn_forward(x, *prepared)
    out = jax.block_until_ready(out)

    ref = rnn_reference(x, *params)
    # Tolerance relaxed (vs 1e-5) because the recurrent matmul uses bf16 MXU
    # inputs (f32 accumulation); expected deviation is ~1e-3.
    np.testing.assert_allclose(np.asarray(out), np.asarray(ref), rtol=2e-2, atol=2e-2)
    assert out.shape == (B, 1)

    print("KERNEL_OK")
</pallas_src>

<mosaic_0001>
module attributes {stable_mosaic.version = 11 : i64} {
  func.func @_gru_mlp_kernel(%arg0: memref<16x16xf32, #tpu.memory_space<vmem>>, %arg1: memref<272x384xf32, #tpu.memory_space<vmem>>, %arg2: memref<128x384xbf16, #tpu.memory_space<vmem>>, %arg3: memref<1x768xf32, #tpu.memory_space<vmem>>, %arg4: memref<2x1xf32, #tpu.memory_space<vmem>>) attributes {dimension_semantics = [], scalar_prefetch = 0 : i64, scratch_operands = 0 : i64, tpu.core_type = #tpu.core_type<tc>} {
    %c0 = arith.constant 0 : index
    %c0_0 = arith.constant 0 : index
    %0 = vector.load %arg1[%c0, %c0_0] : memref<272x384xf32, #tpu.memory_space<vmem>>, vector<16x384xf32>
    %c16 = arith.constant 16 : index
    %c0_1 = arith.constant 0 : index
    %1 = vector.load %arg1[%c16, %c0_1] : memref<272x384xf32, #tpu.memory_space<vmem>>, vector<128x128xf32>
    %c144 = arith.constant 144 : index
    %c0_2 = arith.constant 0 : index
    %2 = vector.load %arg1[%c144, %c0_2] : memref<272x384xf32, #tpu.memory_space<vmem>>, vector<128x128xf32>
    %c0_3 = arith.constant 0 : index
    %c0_4 = arith.constant 0 : index
    %3 = vector.load %arg2[%c0_3, %c0_4] : memref<128x384xbf16, #tpu.memory_space<vmem>>, vector<128x256xbf16>
    %c0_5 = arith.constant 0 : index
    %c256 = arith.constant 256 : index
    %4 = vector.load %arg2[%c0_5, %c256] : memref<128x384xbf16, #tpu.memory_space<vmem>>, vector<128x128xbf16>
    %c0_6 = arith.constant 0 : index
    %c0_7 = arith.constant 0 : index
    %5 = vector.load %arg3[%c0_6, %c0_7] : memref<1x768xf32, #tpu.memory_space<vmem>>, vector<1x384xf32>
    %c0_8 = arith.constant 0 : index
    %c512 = arith.constant 512 : index
    %6 = vector.load %arg3[%c0_8, %c512] : memref<1x768xf32, #tpu.memory_space<vmem>>, vector<1x128xf32>
    %c0_9 = arith.constant 0 : index
    %c640 = arith.constant 640 : index
    %7 = vector.load %arg3[%c0_9, %c640] : memref<1x768xf32, #tpu.memory_space<vmem>>, vector<1x1xf32>
    %c0_10 = arith.constant 0 : index
    %c384 = arith.constant 384 : index
    %8 = vector.load %arg3[%c0_10, %c384] : memref<1x768xf32, #tpu.memory_space<vmem>>, vector<1x128xf32>
    %9 = vector.shape_cast %8 : vector<1x128xf32> to vector<1x128xf32>
    %10 = vector.broadcast %9 : vector<1x128xf32> to vector<2x128xf32>
    %c0_11 = arith.constant 0 : index
    %c0_12 = arith.constant 0 : index
    %11 = vector.load %arg0[%c0_11, %c0_12] : memref<16x16xf32, #tpu.memory_space<vmem>>, vector<16x16xf32>
    %cst = arith.constant dense<0.000000e+00> : vector<16x384xf32>
    %12 = tpu.matmul %11, %0, %cst {dimension_numbers = #tpu.dot_dimension_numbers<[1], [0], [0], [1], [0, 0, 1, 1], [], []>} : vector<16x16xf32>, vector<16x384xf32>, vector<16x384xf32> -> vector<16x384xf32>
    %13 = vector.broadcast %5 : vector<1x384xf32> to vector<16x384xf32>
    %14 = arith.addf %12, %13 : vector<16x384xf32>
    %cst_13 = arith.constant 0.000000e+00 : f32
    %15 = vector.broadcast %cst_13 : f32 to vector<2x128xf32>
    %16 = vector.extract_strided_slice %14 {offsets = [0, 0], sizes = [2, 384], strides = [1, 1]} : vector<16x384xf32> to vector<2x384xf32>
    %17 = arith.truncf %15 : vector<2x128xf32> to vector<2x128xbf16>
    %cst_14 = arith.constant dense<0.000000e+00> : vector<2x256xf32>
    %18 = tpu.matmul %17, %3, %cst_14 {dimension_numbers = #tpu.dot_dimension_numbers<[1], [0], [0], [1], [0, 0, 1, 1], [], []>} : vector<2x128xbf16>, vector<128x256xbf16>, vector<2x256xf32> -> vector<2x256xf32>
    %cst_15 = arith.constant dense<0.000000e+00> : vector<2x128xf32>
    %19 = tpu.matmul %17, %4, %cst_15 {dimension_numbers = #tpu.dot_dimension_numbers<[1], [0], [0], [1], [0, 0, 1, 1], [], []>} : vector<2x128xbf16>, vector<128x128xbf16>, vector<2x128xf32> -> vector<2x128xf32>
    %20 = vector.extract_strided_slice %16 {offsets = [0, 0], sizes = [2, 256], strides = [1, 1]} : vector<2x384xf32> to vector<2x256xf32>
    %21 = arith.addf %20, %18 : vector<2x256xf32>
    %22 = arith.negf %21 : vector<2x256xf32>
    %23 = math.exp %22 : vector<2x256xf32>
    %cst_16 = arith.constant 1.000000e+00 : f32
    %24 = vector.broadcast %cst_16 : f32 to vector<2x256xf32>
    %25 = arith.addf %24, %23 : vector<2x256xf32>
    %26 = arith.divf %24, %25 : vector<2x256xf32>
    %27 = vector.extract_strided_slice %26 {offsets = [0, 0], sizes = [2, 128], strides = [1, 1]} : vector<2x256xf32> to vector<2x128xf32>
    %28 = vector.extract_strided_slice %26 {offsets = [0, 128], sizes = [2, 128], strides = [1, 1]} : vector<2x256xf32> to vector<2x128xf32>
    %29 = vector.extract_strided_slice %16 {offsets = [0, 256], sizes = [2, 128], strides = [1, 1]} : vector<2x384xf32> to vector<2x128xf32>
    %30 = arith.addf %19, %10 : vector<2x128xf32>
    %31 = arith.mulf %27, %30 : vector<2x128xf32>
    %32 = arith.addf %29, %31 : vector<2x128xf32>
    %33 = math.tanh %32 : vector<2x128xf32>
    %34 = arith.subf %15, %33 : vector<2x128xf32>
    %35 = arith.mulf %28, %34 : vector<2x128xf32>
    %36 = arith.addf %33, %35 : vector<2x128xf32>
    %37 = vector.extract_strided_slice %14 {offsets = [2, 0], sizes = [2, 384], strides = [1, 1]} : vector<16x384xf32> to vector<2x384xf32>
    %38 = arith.truncf %36 : vector<2x128xf32> to vector<2x128xbf16>
    %cst_17 = arith.constant dense<0.000000e+00> : vector<2x256xf32>
    %39 = tpu.matmul %38, %3, %cst_17 {dimension_numbers = #tpu.dot_dimension_numbers<[1], [0], [0], [1], [0, 0, 1, 1], [], []>} : vector<2x128xbf16>, vector<128x256xbf16>, vector<2x256xf32> -> vector<2x256xf32>
    %cst_18 = arith.constant dense<0.000000e+00> : vector<2x128xf32>
    %40 = tpu.matmul %38, %4, %cst_18 {dimension_numbers = #tpu.dot_dimension_numbers<[1], [0], [0], [1], [0, 0, 1, 1], [], []>} : vector<2x128xbf16>, vector<128x128xbf16>, vector<2x128xf32> -> vector<2x128xf32>
    %41 = vector.extract_strided_slice %37 {offsets = [0, 0], sizes = [2, 256], strides = [1, 1]} : vector<2x384xf32> to vector<2x256xf32>
    %42 = arith.addf %41, %39 : vector<2x256xf32>
    %43 = arith.negf %42 : vector<2x256xf32>
    %44 = math.exp %43 : vector<2x256xf32>
    %cst_19 = arith.constant 1.000000e+00 : f32
    %45 = vector.broadcast %cst_19 : f32 to vector<2x256xf32>
    %46 = arith.addf %45, %44 : vector<2x256xf32>
    %47 = arith.divf %45, %46 : vector<2x256xf32>
    %48 = vector.extract_strided_slice %47 {offsets = [0, 0], sizes = [2, 128], strides = [1, 1]} : vector<2x256xf32> to vector<2x128xf32>
    %49 = vector.extract_strided_slice %47 {offsets = [0, 128], sizes = [2, 128], strides = [1, 1]} : vector<2x256xf32> to vector<2x128xf32>
    %50 = vector.extract_strided_slice %37 {offsets = [0, 256], sizes = [2, 128], strides = [1, 1]} : vector<2x384xf32> to vector<2x128xf32>
    %51 = arith.addf %40, %10 : vector<2x128xf32>
    %52 = arith.mulf %48, %51 : vector<2x128xf32>
    %53 = arith.addf %50, %52 : vector<2x128xf32>
    %54 = math.tanh %53 : vector<2x128xf32>
    %55 = arith.subf %36, %54 : vector<2x128xf32>
    %56 = arith.mulf %49, %55 : vector<2x128xf32>
    %57 = arith.addf %54, %56 : vector<2x128xf32>
    %58 = vector.extract_strided_slice %14 {offsets = [4, 0], sizes = [2, 384], strides = [1, 1]} : vector<16x384xf32> to vector<2x384xf32>
    %59 = arith.truncf %57 : vector<2x128xf32> to vector<2x128xbf16>
    %cst_20 = arith.constant dense<0.000000e+00> : vector<2x256xf32>
    %60 = tpu.matmul %59, %3, %cst_20 {dimension_numbers = #tpu.dot_dimension_numbers<[1], [0], [0], [1], [0, 0, 1, 1], [], []>} : vector<2x128xbf16>, vector<128x256xbf16>, vector<2x256xf32> -> vector<2x256xf32>
    %cst_21 = arith.constant dense<0.000000e+00> : vector<2x128xf32>
    %61 = tpu.matmul %59, %4, %cst_21 {dimension_numbers = #tpu.dot_dimension_numbers<[1], [0], [0], [1], [0, 0, 1, 1], [], []>} : vector<2x128xbf16>, vector<128x128xbf16>, vector<2x128xf32> -> vector<2x128xf32>
    %62 = vector.extract_strided_slice %58 {offsets = [0, 0], sizes = [2, 256], strides = [1, 1]} : vector<2x384xf32> to vector<2x256xf32>
    %63 = arith.addf %62, %60 : vector<2x256xf32>
    %64 = arith.negf %63 : vector<2x256xf32>
    %65 = math.exp %64 : vector<2x256xf32>
    %cst_22 = arith.constant 1.000000e+00 : f32
    %66 = vector.broadcast %cst_22 : f32 to vector<2x256xf32>
    %67 = arith.addf %66, %65 : vector<2x256xf32>
    %68 = arith.divf %66, %67 : vector<2x256xf32>
    %69 = vector.extract_strided_slice %68 {offsets = [0, 0], sizes = [2, 128], strides = [1, 1]} : vector<2x256xf32> to vector<2x128xf32>
    %70 = vector.extract_strided_slice %68 {offsets = [0, 128], sizes = [2, 128], strides = [1, 1]} : vector<2x256xf32> to vector<2x128xf32>
    %71 = vector.extract_strided_slice %58 {offsets = [0, 256], sizes = [2, 128], strides = [1, 1]} : vector<2x384xf32> to vector<2x128xf32>
    %72 = arith.addf %61, %10 : vector<2x128xf32>
    %73 = arith.mulf %69, %72 : vector<2x128xf32>
    %74 = arith.addf %71, %73 : vector<2x128xf32>
    %75 = math.tanh %74 : vector<2x128xf32>
    %76 = arith.subf %57, %75 : vector<2x128xf32>
    %77 = arith.mulf %70, %76 : vector<2x128xf32>
    %78 = arith.addf %75, %77 : vector<2x128xf32>
    %79 = vector.extract_strided_slice %14 {offsets = [6, 0], sizes = [2, 384], strides = [1, 1]} : vector<16x384xf32> to vector<2x384xf32>
    %80 = arith.truncf %78 : vector<2x128xf32> to vector<2x128xbf16>
    %cst_23 = arith.constant dense<0.000000e+00> : vector<2x256xf32>
    %81 = tpu.matmul %80, %3, %cst_23 {dimension_numbers = #tpu.dot_dimension_numbers<[1], [0], [0], [1], [0, 0, 1, 1], [], []>} : vector<2x128xbf16>, vector<128x256xbf16>, vector<2x256xf32> -> vector<2x256xf32>
    %cst_24 = arith.constant dense<0.000000e+00> : vector<2x128xf32>
    %82 = tpu.matmul %80, %4, %cst_24 {dimension_numbers = #tpu.dot_dimension_numbers<[1], [0], [0], [1], [0, 0, 1, 1], [], []>} : vector<2x128xbf16>, vector<128x128xbf16>, vector<2x128xf32> -> vector<2x128xf32>
    %83 = vector.extract_strided_slice %79 {offsets = [0, 0], sizes = [2, 256], strides = [1, 1]} : vector<2x384xf32> to vector<2x256xf32>
    %84 = arith.addf %83, %81 : vector<2x256xf32>
    %85 = arith.negf %84 : vector<2x256xf32>
    %86 = math.exp %85 : vector<2x256xf32>
    %cst_25 = arith.constant 1.000000e+00 : f32
    %87 = vector.broadcast %cst_25 : f32 to vector<2x256xf32>
    %88 = arith.addf %87, %86 : vector<2x256xf32>
    %89 = arith.divf %87, %88 : vector<2x256xf32>
    %90 = vector.extract_strided_slice %89 {offsets = [0, 0], sizes = [2, 128], strides = [1, 1]} : vector<2x256xf32> to vector<2x128xf32>
    %91 = vector.extract_strided_slice %89 {offsets = [0, 128], sizes = [2, 128], strides = [1, 1]} : vector<2x256xf32> to vector<2x128xf32>
    %92 = vector.extract_strided_slice %79 {offsets = [0, 256], sizes = [2, 128], strides = [1, 1]} : vector<2x384xf32> to vector<2x128xf32>
    %93 = arith.addf %82, %10 : vector<2x128xf32>
    %94 = arith.mulf %90, %93 : vector<2x128xf32>
    %95 = arith.addf %92, %94 : vector<2x128xf32>
    %96 = math.tanh %95 : vector<2x128xf32>
    %97 = arith.subf %78, %96 : vector<2x128xf32>
    %98 = arith.mulf %91, %97 : vector<2x128xf32>
    %99 = arith.addf %96, %98 : vector<2x128xf32>
    %100 = vector.extract_strided_slice %14 {offsets = [8, 0], sizes = [2, 384], strides = [1, 1]} : vector<16x384xf32> to vector<2x384xf32>
    %101 = arith.truncf %99 : vector<2x128xf32> to vector<2x128xbf16>
    %cst_26 = arith.constant dense<0.000000e+00> : vector<2x256xf32>
    %102 = tpu.matmul %101, %3, %cst_26 {dimension_numbers = #tpu.dot_dimension_numbers<[1], [0], [0], [1], [0, 0, 1, 1], [], []>} : vector<2x128xbf16>, vector<128x256xbf16>, vector<2x256xf32> -> vector<2x256xf32>
    %cst_27 = arith.constant dense<0.000000e+00> : vector<2x128xf32>
    %103 = tpu.matmul %101, %4, %cst_27 {dimension_numbers = #tpu.dot_dimension_numbers<[1], [0], [0], [1], [0, 0, 1, 1], [], []>} : vector<2x128xbf16>, vector<128x128xbf16>, vector<2x128xf32> -> vector<2x128xf32>
    %104 = vector.extract_strided_slice %100 {offsets = [0, 0], sizes = [2, 256], strides = [1, 1]} : vector<2x384xf32> to vector<2x256xf32>
    %105 = arith.addf %104, %102 : vector<2x256xf32>
    %106 = arith.negf %105 : vector<2x256xf32>
    %107 = math.exp %106 : vector<2x256xf32>
    %cst_28 = arith.constant 1.000000e+00 : f32
    %108 = vector.broadcast %cst_28 : f32 to vector<2x256xf32>
    %109 = arith.addf %108, %107 : vector<2x256xf32>
    %110 = arith.divf %108, %109 : vector<2x256xf32>
    %111 = vector.extract_strided_slice %110 {offsets = [0, 0], sizes = [2, 128], strides = [1, 1]} : vector<2x256xf32> to vector<2x128xf32>
    %112 = vector.extract_strided_slice %110 {offsets = [0, 128], sizes = [2, 128], strides = [1, 1]} : vector<2x256xf32> to vector<2x128xf32>
    %113 = vector.extract_strided_slice %100 {offsets = [0, 256], sizes = [2, 128], strides = [1, 1]} : vector<2x384xf32> to vector<2x128xf32>
    %114 = arith.addf %103, %10 : vector<2x128xf32>
    %115 = arith.mulf %111, %114 : vector<2x128xf32>
    %116 = arith.addf %113, %115 : vector<2x128xf32>
    %117 = math.tanh %116 : vector<2x128xf32>
    %118 = arith.subf %99, %117 : vector<2x128xf32>
    %119 = arith.mulf %112, %118 : vector<2x128xf32>
    %120 = arith.addf %117, %119 : vector<2x128xf32>
    %121 = vector.extract_strided_slice %14 {offsets = [10, 0], sizes = [2, 384], strides = [1, 1]} : vector<16x384xf32> to vector<2x384xf32>
    %122 = arith.truncf %120 : vector<2x128xf32> to vector<2x128xbf16>
    %cst_29 = arith.constant dense<0.000000e+00> : vector<2x256xf32>
    %123 = tpu.matmul %122, %3, %cst_29 {dimension_numbers = #tpu.dot_dimension_numbers<[1], [0], [0], [1], [0, 0, 1, 1], [], []>} : vector<2x128xbf16>, vector<128x256xbf16>, vector<2x256xf32> -> vector<2x256xf32>
    %cst_30 = arith.constant dense<0.000000e+00> : vector<2x128xf32>
    %124 = tpu.matmul %122, %4, %cst_30 {dimension_numbers = #tpu.dot_dimension_numbers<[1], [0], [0], [1], [0, 0, 1, 1], [], []>} : vector<2x128xbf16>, vector<128x128xbf16>, vector<2x128xf32> -> vector<2x128xf32>
    %125 = vector.extract_strided_slice %121 {offsets = [0, 0], sizes = [2, 256], strides = [1, 1]} : vector<2x384xf32> to vector<2x256xf32>
    %126 = arith.addf %125, %123 : vector<2x256xf32>
    %127 = arith.negf %126 : vector<2x256xf32>
    %128 = math.exp %127 : vector<2x256xf32>
    %cst_31 = arith.constant 1.000000e+00 : f32
    %129 = vector.broadcast %cst_31 : f32 to vector<2x256xf32>
    %130 = arith.addf %129, %128 : vector<2x256xf32>
    %131 = arith.divf %129, %130 : vector<2x256xf32>
    %132 = vector.extract_strided_slice %131 {offsets = [0, 0], sizes = [2, 128], strides = [1, 1]} : vector<2x256xf32> to vector<2x128xf32>
    %133 = vector.extract_strided_slice %131 {offsets = [0, 128], sizes = [2, 128], strides = [1, 1]} : vector<2x256xf32> to vector<2x128xf32>
    %134 = vector.extract_strided_slice %121 {offsets = [0, 256], sizes = [2, 128], strides = [1, 1]} : vector<2x384xf32> to vector<2x128xf32>
    %135 = arith.addf %124, %10 : vector<2x128xf32>
    %136 = arith.mulf %132, %135 : vector<2x128xf32>
    %137 = arith.addf %134, %136 : vector<2x128xf32>
    %138 = math.tanh %137 : vector<2x128xf32>
    %139 = arith.subf %120, %138 : vector<2x128xf32>
    %140 = arith.mulf %133, %139 : vector<2x128xf32>
    %141 = arith.addf %138, %140 : vector<2x128xf32>
    %142 = vector.extract_strided_slice %14 {offsets = [12, 0], sizes = [2, 384], strides = [1, 1]} : vector<16x384xf32> to vector<2x384xf32>
    %143 = arith.truncf %141 : vector<2x128xf32> to vector<2x128xbf16>
    %cst_32 = arith.constant dense<0.000000e+00> : vector<2x256xf32>
    %144 = tpu.matmul %143, %3, %cst_32 {dimension_numbers = #tpu.dot_dimension_numbers<[1], [0], [0], [1], [0, 0, 1, 1], [], []>} : vector<2x128xbf16>, vector<128x256xbf16>, vector<2x256xf32> -> vector<2x256xf32>
    %cst_33 = arith.constant dense<0.000000e+00> : vector<2x128xf32>
    %145 = tpu.matmul %143, %4, %cst_33 {dimension_numbers = #tpu.dot_dimension_numbers<[1], [0], [0], [1], [0, 0, 1, 1], [], []>} : vector<2x128xbf16>, vector<128x128xbf16>, vector<2x128xf32> -> vector<2x128xf32>
    %146 = vector.extract_strided_slice %142 {offsets = [0, 0], sizes = [2, 256], strides = [1, 1]} : vector<2x384xf32> to vector<2x256xf32>
    %147 = arith.addf %146, %144 : vector<2x256xf32>
    %148 = arith.negf %147 : vector<2x256xf32>
    %149 = math.exp %148 : vector<2x256xf32>
    %cst_34 = arith.constant 1.000000e+00 : f32
    %150 = vector.broadcast %cst_34 : f32 to vector<2x256xf32>
    %151 = arith.addf %150, %149 : vector<2x256xf32>
    %152 = arith.divf %150, %151 : vector<2x256xf32>
    %153 = vector.extract_strided_slice %152 {offsets = [0, 0], sizes = [2, 128], strides = [1, 1]} : vector<2x256xf32> to vector<2x128xf32>
    %154 = vector.extract_strided_slice %152 {offsets = [0, 128], sizes = [2, 128], strides = [1, 1]} : vector<2x256xf32> to vector<2x128xf32>
    %155 = vector.extract_strided_slice %142 {offsets = [0, 256], sizes = [2, 128], strides = [1, 1]} : vector<2x384xf32> to vector<2x128xf32>
    %156 = arith.addf %145, %10 : vector<2x128xf32>
    %157 = arith.mulf %153, %156 : vector<2x128xf32>
    %158 = arith.addf %155, %157 : vector<2x128xf32>
    %159 = math.tanh %158 : vector<2x128xf32>
    %160 = arith.subf %141, %159 : vector<2x128xf32>
    %161 = arith.mulf %154, %160 : vector<2x128xf32>
    %162 = arith.addf %159, %161 : vector<2x128xf32>
    %163 = vector.extract_strided_slice %14 {offsets = [14, 0], sizes = [2, 384], strides = [1, 1]} : vector<16x384xf32> to vector<2x384xf32>
    %164 = arith.truncf %162 : vector<2x128xf32> to vector<2x128xbf16>
    %cst_35 = arith.constant dense<0.000000e+00> : vector<2x256xf32>
    %165 = tpu.matmul %164, %3, %cst_35 {dimension_numbers = #tpu.dot_dimension_numbers<[1], [0], [0], [1], [0, 0, 1, 1], [], []>} : vector<2x128xbf16>, vector<128x256xbf16>, vector<2x256xf32> -> vector<2x256xf32>
    %cst_36 = arith.constant dense<0.000000e+00> : vector<2x128xf32>
    %166 = tpu.matmul %164, %4, %cst_36 {dimension_numbers = #tpu.dot_dimension_numbers<[1], [0], [0], [1], [0, 0, 1, 1], [], []>} : vector<2x128xbf16>, vector<128x128xbf16>, vector<2x128xf32> -> vector<2x128xf32>
    %167 = vector.extract_strided_slice %163 {offsets = [0, 0], sizes = [2, 256], strides = [1, 1]} : vector<2x384xf32> to vector<2x256xf32>
    %168 = arith.addf %167, %165 : vector<2x256xf32>
    %169 = arith.negf %168 : vector<2x256xf32>
    %170 = math.exp %169 : vector<2x256xf32>
    %cst_37 = arith.constant 1.000000e+00 : f32
    %171 = vector.broadcast %cst_37 : f32 to vector<2x256xf32>
    %172 = arith.addf %171, %170 : vector<2x256xf32>
    %173 = arith.divf %171, %172 : vector<2x256xf32>
    %174 = vector.extract_strided_slice %173 {offsets = [0, 0], sizes = [2, 128], strides = [1, 1]} : vector<2x256xf32> to vector<2x128xf32>
    %175 = vector.extract_strided_slice %173 {offsets = [0, 128], sizes = [2, 128], strides = [1, 1]} : vector<2x256xf32> to vector<2x128xf32>
    %176 = vector.extract_strided_slice %163 {offsets = [0, 256], sizes = [2, 128], strides = [1, 1]} : vector<2x384xf32> to vector<2x128xf32>
    %177 = arith.addf %166, %10 : vector<2x128xf32>
    %178 = arith.mulf %174, %177 : vector<2x128xf32>
    %179 = arith.addf %176, %178 : vector<2x128xf32>
    %180 = math.tanh %179 : vector<2x128xf32>
    %181 = arith.subf %162, %180 : vector<2x128xf32>
    %182 = arith.mulf %175, %181 : vector<2x128xf32>
    %183 = arith.addf %180, %182 : vector<2x128xf32>
    %cst_38 = arith.constant dense<0.000000e+00> : vector<2x128xf32>
    %184 = tpu.matmul %183, %1, %cst_38 {dimension_numbers = #tpu.dot_dimension_numbers<[1], [0], [0], [1], [0, 0, 1, 1], [], []>} : vector<2x128xf32>, vector<128x128xf32>, vector<2x128xf32> -> vector<2x128xf32>
    %185 = vector.broadcast %6 : vector<1x128xf32> to vector<2x128xf32>
    %186 = arith.addf %184, %185 : vector<2x128xf32>
    %cst_39 = arith.constant 0.000000e+00 : f32
    %187 = vector.broadcast %cst_39 : f32 to vector<2x128xf32>
    %188 = arith.maximumf %186, %187 : vector<2x128xf32>
    %cst_40 = arith.constant dense<0.000000e+00> : vector<2x128xf32>
    %189 = tpu.matmul %188, %2, %cst_40 {dimension_numbers = #tpu.dot_dimension_numbers<[1], [0], [0], [1], [0, 0, 1, 1], [], []>} : vector<2x128xf32>, vector<128x128xf32>, vector<2x128xf32> -> vector<2x128xf32>
    %190 = vector.extract_strided_slice %189 {offsets = [0, 0], sizes = [2, 1], strides = [1, 1]} : vector<2x128xf32> to vector<2x1xf32>
    %191 = vector.broadcast %7 : vector<1x1xf32> to vector<2x1xf32>
    %192 = arith.addf %190, %191 : vector<2x1xf32>
    %c0_41 = arith.constant 0 : index
    %c0_42 = arith.constant 0 : index
    %193 = vector.load %arg4[%c0_41, %c0_42] : memref<2x1xf32, #tpu.memory_space<vmem>>, vector<2x1xf32>
    tpu.vector_store %arg4[%c0_41, %c0_42], %192 {strides = array<i32>} : memref<2x1xf32, #tpu.memory_space<vmem>>, vector<2x1xf32>,
    return
  }
}

</mosaic_0001>

<bundles_post_ra>
// kernel: _rnn_forward.1
= control target key start
LH: loop header
LB: loop body
LE: loop exit
PB: predicated region body
PF: predicated region fallthrough
CT: control target
= control target key end

     0   :  { %9 = vsyncpa [#allocation3], 0  ;;  %s2662_s0 = inlined_call_operand.vmem [shape: f32[16,16], index: 0, kind: input, shape index: {}]   ;;  %s2663_s1 = inlined_call_operand.hbm [shape: f32[272,384], index: 1, kind: input, shape index: {}]   ;;  %s2664_s2 = inlined_call_operand.hbm [shape: bf16[128,384], index: 2, kind: input, shape index: {}]   ;;  %s2665_s3 = inlined_call_operand.vmem [shape: f32[1,768], index: 3, kind: input, shape index: {}]   ;;  %s2666_s4 = inlined_call_operand.vmem [shape: f32[2,1], index: 4, kind: output, shape index: {}]  }
   0x1   :  { %10 = vsyncpa [#allocation5], 0  ;;  %s2153_s15 = smov [#allocation2]   ;;  %s2105_s19 = scalar_lea.hbm %s2663_s1, 13056 }
   0x2   :  { %s18_s16 = sshll.u32 %s2153_s15, 4  ;;  %p2106_p0 = scmp.ne.s32.totalorder %s2663_s1, %s2105_s19  ;;  %s19_s16 = int_to_ptr.vmem [resolvable:$true] %s18_s16 }
   0x3   :  { %p2109_p1 = scmp.lt.u32.totalorder %s2105_s19, %s2663_s1 }
   0x5   :  { %p2111_p2 = pnand %p2109_p1, %p2106_p0 }
   0x7   :  { %2114 = shalt.err (!%p2111_p2)
}
   0x8   :  { %s2115_s24 = scalar_lea.vmem %s19_s16, 13056  ;;  %p2120_p4 = scmp.lt.s32.totalorder %s19_s16, %s19_s16 }
   0x9   :  { %p2116_p3 = scmp.ne.s32.totalorder %s19_s16, %s2115_s24  ;;  %p2121_p5 = scmp.lt.s32.totalorder %s2115_s24, %s2115_s24 }
   0xb   :  { %p2122_p6 = por %p2121_p5, %p2120_p4 }
   0xd   :  { %p2123_p7 = pnand %p2122_p6, %p2116_p3 }
   0xf   :  { %2126 = shalt.err (!%p2123_p7)
}
  0x10   :  { %s2154_s25 = smov 384   ;;  %s2155_s26 = smov 24  }
  0x11   :  { %24 = dma.hbm_to_vmem [thread:$0]  %s2663_s1, 13056, %s19_s16, [#allocation3], %s2154_s25, %s2154_s25, %s2155_s26  }
  0x12   :  { %s2156_s29 = smov [#allocation4]   ;;  %s2127_s7 = scalar_lea.hbm %s2664_s2, 3072 }
  0x13   :  { %s30_s30 = sshll.u32 %s2156_s29, 4  ;;  %p2128_p8 = scmp.ne.s32.totalorder %s2664_s2, %s2127_s7  ;;  %s31_s30 = int_to_ptr.vmem [resolvable:$true] %s30_s30 }
  0x14   :  { %p2131_p9 = scmp.lt.u32.totalorder %s2127_s7, %s2664_s2 }
  0x16   :  { %p2133_p10 = pnand %p2131_p9, %p2128_p8 }
  0x18   :  { %2136 = shalt.err (!%p2133_p10)
}
  0x19   :  { %s2137_s12 = scalar_lea.vmem %s31_s30, 3072  ;;  %p2142_p12 = scmp.lt.s32.totalorder %s31_s30, %s31_s30 }
  0x1a   :  { %p2138_p11 = scmp.ne.s32.totalorder %s31_s30, %s2137_s12  ;;  %p2143_p13 = scmp.lt.s32.totalorder %s2137_s12, %s2137_s12 }
  0x1c   :  { %p2144_p0 = por %p2143_p13, %p2142_p12 }
  0x1e   :  { %p2145_p1 = pnand %p2144_p0, %p2138_p11 }
  0x20   :  { %2148 = shalt.err (!%p2145_p1)
}
  0x21   :  { %s2157_s1 = smov 192   ;;  %s2158_s13 = smov 12  }
  0x22   :  { %36 = dma.hbm_to_vmem [thread:$0]  %s2664_s2, 3072, %s31_s30, [#allocation5], %s2157_s1, %s2157_s1, %s2158_s13  }
  0x23   :  { %2149 = dma.done.wait [#allocation3], 13056  }
  0x24   :  { %2150 = vsyncadd [#allocation3], 4294954240 }
  0x25   :  { %2151 = dma.done.wait [#allocation5], 3072  }
  0x26   :  { %2152 = vsyncadd [#allocation5], 4294964224  ;;  %v2159_v0 = vmov 0.0   ;;  %v47_v1 = vld [vmem:[#allocation2 + $0x8] sm:$0xff]  ;;  %v50_v2 = vld [vmem:[#allocation2 + $0x20] sm:$0xff]  ;;  %vm144_vm0 = vcmask 130048   ;;  %v129_v37 = vlaneseq }
  0x27   :  { %215 = vmatprep.mubr.f32.mxu0 %v2159_v0  ;;  %v46_v3 = vld [vmem:[#allocation2] sm:$0xff]  ;;  %v1916_v4 = vpack.c.bf16 %v50_v2, %v47_v1  ;;  %v49_v5 = vld [vmem:[#allocation2 + $0x18] sm:$0xff]  ;;  %v2226_v11 = vld [vmem:[#allocation4 + $0x18] ss:$12 sps:$4 sm:$0xff]   ;;  %v2160_v20 = vmov 0   ;;  %vm2161_vm1 = vmmov 0  }
  0x28   :  { %v126_v6 = vld [vmem:[%s2662_s0] sm:$0xff]  ;;  %v1918_v7 = vpack.c.bf16 %v49_v5, %v46_v3  ;;  %v2219_v9 = vld [vmem:[#allocation4] ss:$12 sps:$4 sm:$0xff]   ;;  %v2222_v10 = vld [vmem:[#allocation4 + $0x1c] ss:$12 sps:$4 sm:$0xff]   ;;  %v130_v38 = vshrl.u32 %v129_v37, 7 }
  0x29   :  { %v2216_v8 = vld [vmem:[#allocation4 + $0x4] ss:$12 sps:$4 sm:$0xff]   ;;  %1683 = vmatprep.mubr.msk.f32.mxu1 %vm144_vm0, %v126_v6  ;;  %1917 = vmatprep.subr.bf16.mxu0 %v1916_v4  ;;  %v51_v13 = vld [vmem:[#allocation2 + $0x28] sm:$0xff]  ;;  %v2230_v14 = vld [vmem:[#allocation4 + $0x34] ss:$12 sps:$4 sm:$0xff]   ;;  %vm1514_vm2 = vcmask 1024  }
  0x2a   :  { %1919 = vmatpush1.bf16.msra.mxu0 %v1918_v7  ;;  %v48_v12 = vld [vmem:[#allocation2 + $0x10] sm:$0xff]  ;;  %v127_v16 = vld [vmem:[%s2662_s0 + $0x8] sm:$0xff]  ;;  %v2239_v18 = vld [vmem:[#allocation4 + $0x8] ss:$12 sps:$4 sm:$0xff]   ;;  %v131_v39 = vsub.s32 0, %v130_v38  ;;  %v135_v42 = vsub.s32 1, %v130_v38 }
  0x2b   :  { %383 = vmatprep.subr.bf16.mxu0 %v2216_v8  ;;  %v1920_v15 = vpack.c.bf16 %v51_v13, %v48_v12  ;;  %v2237_v17 = vld [vmem:[#allocation4 + $0x30] ss:$12 sps:$4 sm:$0xff]   ;;  %v2242_v19 = vld [vmem:[#allocation4 + $0x4c] ss:$12 sps:$4 sm:$0xff]   ;;  %v2246_v21 = vld [vmem:[#allocation4 + $0x48] ss:$12 sps:$4 sm:$0xff]  }
  0x2c   :  { %v2251_v22 = vld [vmem:[#allocation4 + $0x20] ss:$12 sps:$4 sm:$0xff]   ;;  %v2254_v23 = vld [vmem:[#allocation4 + $0x64] ss:$12 sps:$4 sm:$0xff]   ;;  %v2266_v26 = vld [vmem:[#allocation4 + $0x7c] ss:$12 sps:$4 sm:$0xff]  }
  0x2d   :  { %1523 = vmatmul.mubr.msk.f32.vlgmr.msra.gmra.mrb[0].mxu0 %vm144_vm0, %v126_v6  ;;  %1921 = vmatprep.subr.bf16.mxu1 %v1920_v15  ;;  %v2259_v24 = vld [vmem:[#allocation4 + $0x60] ss:$12 sps:$4 sm:$0xff]   ;;  %v2263_v25 = vld [vmem:[#allocation4 + $0x38] ss:$12 sps:$4 sm:$0xff]   ;;  %v2273_v28 = vld [vmem:[#allocation4 + $0x50] ss:$12 sps:$4 sm:$0xff]  }
  0x2e   :  { %384 = vmatpush1.bf16.msra.mxu0 %v2219_v9  ;;  %221 = vmatprep.mubr.f32.mxu0 %v2159_v0  ;;  %v2270_v27 = vld [vmem:[#allocation4 + $0x78] ss:$12 sps:$4 sm:$0xff]   ;;  %v2276_v29 = vld [vmem:[#allocation4 + $0x94] ss:$12 sps:$4 sm:$0xff]   ;;  %v2280_v30 = vld [vmem:[#allocation4 + $0x90] ss:$12 sps:$4 sm:$0xff]  }
  0x2f   :  { %385 = vmatprep.subr.bf16.mxu0 %v2222_v10  ;;  %1923 = vmatpush3.bf16.msra.mxu1 %v1920_v15  ;;  %v2283_v31 = vld [vmem:[#allocation4 + $0x68] ss:$12 sps:$4 sm:$0xff]   ;;  %v2286_v32 = vld [vmem:[#allocation4 + $0xac] ss:$12 sps:$4 sm:$0xff]   ;;  %v2305_v36 = vld [vmem:[#allocation4 + $0xb0] ss:$12 sps:$4 sm:$0xff]  }
  0x30   :  { %1686 = vmatprep.subr.bf16.mxu1 %v2159_v0  ;;  %v2290_v33 = vld [vmem:[#allocation4 + $0xa8] ss:$12 sps:$4 sm:$0xff]   ;;  %v2293_v34 = vld [vmem:[#allocation4 + $0x80] ss:$12 sps:$4 sm:$0xff]   ;;  %v2299_v35 = vld [vmem:[#allocation4 + $0x98] ss:$12 sps:$4 sm:$0xff]  }
  0x31   :  { %1524 = vmatmul.mubr.msk.f32.gmra.mrb[2].mxu0 %vm144_vm0, %v127_v16  ;;  %v116_v40 = vld [vmem:[%s2665_s3] sm:$0x7]  ;;  %v139_v44 = vsub.s32 2, %v130_v38  ;;  %v2364_v12 = vld [vmem:[%s2665_s3 + $0x3] ss:$0 sm:$0xff] }
  0x32   :  { %386 = vmatpush1.bf16.msra.mxu0 %v2226_v11  ;;  %415 = vmatprep.mubr.bf16.mxu0 %v2160_v20  ;;  %v132_v45 = vrot.slane %v116_v40, %v131_v39  ;;  %v136_v46 = vrot.slane %v116_v40, %v135_v42 }
  0x33   :  { %387 = vmatprep.subr.bf16.mxu0 %v2230_v14  ;;  %1684 = vmatmul.mubr.msk.f32.vlgmr.msra.gmra.mrb[0].mxu1 %vm144_vm0, %v127_v16  ;;  %v140_v48 = vrot.slane %v116_v40, %v139_v44 }
  0x34   :  { %1687 = vmatpush3.bf16.msra.mxu1 %v2239_v18  ;;  %1702 = vmatprep.mubr.msk.bf16.mxu1 %vm2161_vm1, %v2159_v0 }
  0x35   :  { %1688 = vmatprep.subr.bf16.mxu1 %v2159_v0 }
  0x36   :  { %388 = vmatpush1.bf16.msra.mxu0 %v2237_v17 }
  0x37   :  { %389 = vmatprep.subr.bf16.mxu0 %v2242_v19 }
  0x38   :  { %1689 = vmatpush3.bf16.msra.mxu1 %v2251_v22 }
  0x39   :  { %1690 = vmatprep.subr.bf16.mxu1 %v2159_v0 }
  0x3a   :  { %390 = vmatpush1.bf16.msra.mxu0 %v2246_v21 }
  0x3b   :  { %391 = vmatprep.subr.bf16.mxu0 %v2254_v23 }
  0x3c   :  { %1691 = vmatpush3.bf16.msra.mxu1 %v2263_v25 }
  0x3d   :  { %1692 = vmatprep.subr.bf16.mxu1 %v2159_v0 }
  0x3e   :  { %392 = vmatpush1.bf16.msra.mxu0 %v2259_v24 }
  0x3f   :  { %393 = vmatprep.subr.bf16.mxu0 %v2266_v26 }
  0x40   :  { %1693 = vmatpush3.bf16.msra.mxu1 %v2273_v28 }
  0x41   :  { %1694 = vmatprep.subr.bf16.mxu1 %v2159_v0 }
  0x42   :  { %394 = vmatpush1.bf16.msra.mxu0 %v2270_v27 }
  0x43   :  { %395 = vmatprep.subr.bf16.mxu0 %v2276_v29 }
  0x44   :  { %1695 = vmatpush3.bf16.msra.mxu1 %v2283_v31 }
  0x45   :  { %1696 = vmatprep.subr.bf16.mxu1 %v2159_v0 }
  0x46   :  { %396 = vmatpush1.bf16.msra.mxu0 %v2280_v30 }
  0x47   :  { %397 = vmatprep.subr.bf16.mxu0 %v2286_v32 }
  0x48   :  { %1697 = vmatpush3.bf16.msra.mxu1 %v2293_v34 }
  0x49   :  { %1698 = vmatprep.subr.bf16.mxu1 %v2159_v0 }
  0x4a   :  { %398 = vmatpush1.bf16.msra.mxu0 %v2290_v33 }
  0x4b   :  { %533 = vmatprep.subr.bf16.mxu0 %v2216_v8 }
  0x4c   :  { %1699 = vmatpush3.bf16.msra.mxu1 %v2299_v35 }
  0x4d   :  { %416 = vmatmul.mubr.bf16.vlgmr.msra.gmra.mrb[4].mxu0 %v2160_v20  ;;  %1700 = vmatprep.subr.bf16.mxu1 %v2159_v0 }
  0x4e   :  { %534 = vmatpush1.bf16.msra.mxu0 %v2219_v9  ;;  %565 = vmatprep.mubr.bf16.mxu0 %v2160_v20 }
  0x4f   :  { %535 = vmatprep.subr.bf16.mxu0 %v2222_v10 }
  0x50   :  { %1701 = vmatpush3.bf16.msra.mxu1 %v2305_v36 }
  0x51   :  { %1706 = vmatprep.subr.bf16.mxu1 %v2159_v0 }
  0x52   :  { %536 = vmatpush1.bf16.msra.mxu0 %v2226_v11 }
  0x53   :  { %537 = vmatprep.subr.bf16.mxu0 %v2230_v14  ;;  %1703 = vmatmul.mubr.bf16.vlgmr.msra.gmra.mrb[4].mxu1 %v2160_v20 }
  0x54   :  { %1707 = vmatpush3.bf16.msra.mxu1 %v2239_v18  ;;  %1722 = vmatprep.mubr.msk.bf16.mxu1 %vm2161_vm1, %v2159_v0 }
  0x55   :  { %1708 = vmatprep.subr.bf16.mxu1 %v2159_v0 }
  0x56   :  { %538 = vmatpush1.bf16.msra.mxu0 %v2237_v17 }
  0x57   :  { %539 = vmatprep.subr.bf16.mxu0 %v2242_v19 }
  0x58   :  { %1709 = vmatpush3.bf16.msra.mxu1 %v2251_v22 }
  0x59   :  { %1710 = vmatprep.subr.bf16.mxu1 %v2159_v0 }
  0x5a   :  { %540 = vmatpush1.bf16.msra.mxu0 %v2246_v21 }
  0x5b   :  { %541 = vmatprep.subr.bf16.mxu0 %v2254_v23 }
  0x5c   :  { %1711 = vmatpush3.bf16.msra.mxu1 %v2263_v25 }
  0x5d   :  { %1712 = vmatprep.subr.bf16.mxu1 %v2159_v0 }
  0x5e   :  { %542 = vmatpush1.bf16.msra.mxu0 %v2259_v24 }
  0x5f   :  { %543 = vmatprep.subr.bf16.mxu0 %v2266_v26 }
  0x60   :  { %1713 = vmatpush3.bf16.msra.mxu1 %v2273_v28 }
  0x61   :  { %1714 = vmatprep.subr.bf16.mxu1 %v2159_v0 }
  0x62   :  { %544 = vmatpush1.bf16.msra.mxu0 %v2270_v27 }
  0x63   :  { %545 = vmatprep.subr.bf16.mxu0 %v2276_v29 }
  0x64   :  { %1715 = vmatpush3.bf16.msra.mxu1 %v2283_v31 }
  0x65   :  { %1716 = vmatprep.subr.bf16.mxu1 %v2159_v0 }
  0x66   :  { %546 = vmatpush1.bf16.msra.mxu0 %v2280_v30 }
  0x67   :  { %547 = vmatprep.subr.bf16.mxu0 %v2286_v32 }
  0x68   :  { %1717 = vmatpush3.bf16.msra.mxu1 %v2293_v34 }
  0x69   :  { %1718 = vmatprep.subr.bf16.mxu1 %v2159_v0 }
  0x6a   :  { %548 = vmatpush1.bf16.msra.mxu0 %v2290_v33 }
  0x6b   :  { %653 = vmatprep.subr.bf16.mxu0 %v2216_v8 }
  0x6c   :  { %1719 = vmatpush3.bf16.msra.mxu1 %v2299_v35 }
  0x6d   :  { %1720 = vmatprep.subr.bf16.mxu1 %v2159_v0 }
  0x70   :  { %1721 = vmatpush3.bf16.msra.mxu1 %v2305_v36 }
  0x71   :  { %1726 = vmatprep.subr.bf16.mxu1 %v2159_v0 }
 0x100   :  { %v217_v41 = vpop.f32.mrb[0].mxu0 }
 0x101   :  { %v219_v43 = vpop.f32.mrb[1].mxu0  ;;  %v2355_v55 = vadd.f32 %v217_v41, %v132_v45 }
 0x102   :  { %v2358_v62 = vadd.f32 %v219_v43, %v136_v46 }
 0x104   :  { %v223_v47 = vpop.f32.mrb[2].mxu0 }
 0x105   :  { %v2349_v49 = vadd.f32 %v223_v47, %v132_v45  ;;  %v225_v50 = vpop.f32.mrb[3].mxu0 }
 0x106   :  { %v2351_v51 = vadd.f32 %v225_v50, %v136_v46  ;;  %v1685_v52 = vpop.f32.mrb[0].mxu1 }
 0x107   :  { %v2353_v53 = vadd.f32 %v1685_v52, %v140_v48  ;;  %v294_v54 = vpop.f32.mrb[1].mxu1 }
 0x108   :  { %v2367_v37 = vadd.f32 %v294_v54, %v140_v48 }
 0x120   :  { %v417_v56 = vpop.f32.mrb[4].mxu0 }
 0x121   :  { %v424_v57 = vadd.f32 %v417_v56, %v2355_v55  ;;  %v419_v58 = vpop.f32.mrb[5].mxu0 }
 0x122   :  { %v421_v59 = vpop.f32.mrb[6].mxu0  ;;  %v425_v1 = vadd.f32 %v419_v58, %v2358_v62 }
 0x123   :  { %v1543_v60 = vmul.f32 -1.442695, %v424_v57  ;;  %v422_v61 = vpop.f32.mrb[7].mxu0 }
 0x124   :  { %v1544_v5 = vmul.f32 -1.442695, %v425_v1 }
 0x125   :  { %2014 = vpow2.f32 %v1543_v60 }
 0x126   :  { %v520_v63 = vpop.f32.mrb[4].mxu1  ;;  %2016 = vpow2.f32 %v1544_v5 }
 0x127   :  { %v1704_v2 = vpop.f32.mrb[5].mxu1  ;;  %v521_v13 = vadd.f32 %v2364_v12, %v520_v63 }
 0x128   :  { %v523_v3 = vpop.f32.mrb[6].mxu1 }
 0x129   :  { %v1705_v4 = vpop.f32.mrb[7].mxu1 }
 0x12f   :  { %v2015_v6 = vpop.eup %2014 }
 0x130   :  { %v432_v7 = vadd.f32 1.0, %v2015_v6  ;;  %v2017_v15 = vpop.eup %2016 }
 0x131   :  { %v433_v39 = vadd.f32 1.0, %v2017_v15 }
 0x132   :  { %2018 = vrcp.f32 %v432_v7 }
 0x13c   :  { %v2019_v16 = vpop.eup %2018 }
 0x13d   :  { %v526_v38 = vmul.f32 %v2019_v16, %v521_v13 }
 0x13f   :  { %v527_v40 = vadd.f32 %v526_v38, %v2367_v37 }
 0x141   :  { %2020 = vtanh.f32 %v527_v40 }
 0x142   :  { %2022 = vrcp.f32 %v433_v39 }
 0x14b   :  { %v2021_v41 = vpop.eup %2020 }
 0x14c   :  { %v529_v42 = vsub.f32 0.0, %v2021_v41  ;;  %v2023_v43 = vpop.eup %2022 }
 0x14e   :  { %v530_v44 = vmul.f32 %v2023_v43, %v529_v42 }
 0x150   :  { %v2370_v45 = vadd.f32 %v2021_v41, %v530_v44 }
 0x152   :  { %v532_v46 = vpack.c.bf16 %v2370_v45, %v2370_v45 }
 0x154   :  { %566 = vmatmul.mubr.bf16.vlgmr.msra.gmra.mrb[8].mxu0 %v532_v46  ;;  %1723 = vmatmul.mubr.bf16.vlgmr.msra.gmra.mrb[8].mxu1 %v532_v46 }
 0x155   :  { %654 = vmatpush1.bf16.msra.mxu0 %v2219_v9  ;;  %1727 = vmatpush3.bf16.msra.mxu1 %v2239_v18 }
 0x156   :  { %655 = vmatprep.subr.bf16.mxu0 %v2222_v10  ;;  %1728 = vmatprep.subr.bf16.mxu1 %v2159_v0 }
 0x157   :  { %685 = vmatprep.mubr.bf16.mxu0 %v2160_v20  ;;  %1742 = vmatprep.mubr.msk.bf16.mxu1 %vm2161_vm1, %v2159_v0 }
 0x159   :  { %656 = vmatpush1.bf16.msra.mxu0 %v2226_v11  ;;  %1729 = vmatpush3.bf16.msra.mxu1 %v2251_v22 }
 0x15a   :  { %657 = vmatprep.subr.bf16.mxu0 %v2230_v14  ;;  %1730 = vmatprep.subr.bf16.mxu1 %v2159_v0 }
 0x15d   :  { %658 = vmatpush1.bf16.msra.mxu0 %v2237_v17  ;;  %1731 = vmatpush3.bf16.msra.mxu1 %v2263_v25 }
 0x15e   :  { %659 = vmatprep.subr.bf16.mxu0 %v2242_v19  ;;  %1732 = vmatprep.subr.bf16.mxu1 %v2159_v0 }
 0x161   :  { %660 = vmatpush1.bf16.msra.mxu0 %v2246_v21  ;;  %1733 = vmatpush3.bf16.msra.mxu1 %v2273_v28 }
 0x162   :  { %661 = vmatprep.subr.bf16.mxu0 %v2254_v23  ;;  %1734 = vmatprep.subr.bf16.mxu1 %v2159_v0 }
 0x165   :  { %662 = vmatpush1.bf16.msra.mxu0 %v2259_v24  ;;  %1735 = vmatpush3.bf16.msra.mxu1 %v2283_v31 }
 0x166   :  { %663 = vmatprep.subr.bf16.mxu0 %v2266_v26  ;;  %1736 = vmatprep.subr.bf16.mxu1 %v2159_v0 }
 0x169   :  { %664 = vmatpush1.bf16.msra.mxu0 %v2270_v27  ;;  %1737 = vmatpush3.bf16.msra.mxu1 %v2293_v34 }
 0x16a   :  { %665 = vmatprep.subr.bf16.mxu0 %v2276_v29  ;;  %1738 = vmatprep.subr.bf16.mxu1 %v2159_v0 }
 0x16d   :  { %666 = vmatpush1.bf16.msra.mxu0 %v2280_v30  ;;  %1739 = vmatpush3.bf16.msra.mxu1 %v2299_v35 }
 0x16e   :  { %667 = vmatprep.subr.bf16.mxu0 %v2286_v32  ;;  %1740 = vmatprep.subr.bf16.mxu1 %v2159_v0 }
 0x171   :  { %668 = vmatpush1.bf16.msra.mxu0 %v2290_v33  ;;  %1741 = vmatpush3.bf16.msra.mxu1 %v2305_v36 }
 0x172   :  { %773 = vmatprep.subr.bf16.mxu0 %v2216_v8  ;;  %1746 = vmatprep.subr.bf16.mxu1 %v2159_v0 }
 0x227   :  { %v567_v47 = vpop.f32.mrb[8].mxu0  ;;  %v628_v48 = vpop.f32.mrb[8].mxu1 }
 0x228   :  { %v576_v50 = vrot.slane %v567_v47, 6  ;;  %v569_v52 = vpop.f32.mrb[9].mxu0  ;;  %v1724_v54 = vpop.f32.mrb[9].mxu1  ;;  %v629_v5 = vadd.f32 %v2364_v12, %v628_v48 }
 0x229   :  { %v571_v56 = vpop.f32.mrb[10].mxu0  ;;  %v631_v57 = vpop.f32.mrb[10].mxu1  ;;  %v577_v63 = vrot.slane %v569_v52, 6 }
 0x22a   :  { %v580_v58 = vadd.f32 %v576_v50, %v2355_v55  ;;  %v572_v59 = vpop.f32.mrb[11].mxu0  ;;  %v1725_v60 = vpop.f32.mrb[11].mxu1  ;;  %v635_v6 = vrot.slane %v629_v5, 6 }
 0x22b   :  { %v581_v1 = vadd.f32 %v577_v63, %v2358_v62 }
 0x22c   :  { %v1553_v61 = vmul.f32 -1.442695, %v580_v58 }
 0x22d   :  { %v1554_v4 = vmul.f32 -1.442695, %v581_v1 }
 0x22e   :  { %2024 = vpow2.f32 %v1553_v61 }
 0x238   :  { %v2025_v2 = vpop.eup %2024 }
 0x239   :  { %v588_v3 = vadd.f32 1.0, %v2025_v2 }
 0x23b   :  { %2026 = vrcp.f32 %v588_v3 }
 0x23c   :  { %2028 = vpow2.f32 %v1554_v4 }
 0x245   :  { %v2027_v7 = vpop.eup %2026 }
 0x246   :  { %v637_v13 = vmul.f32 %v2027_v7, %v635_v6  ;;  %v2029_v16 = vpop.eup %2028 }
 0x247   :  { %v589_v38 = vadd.f32 1.0, %v2029_v16 }
 0x248   :  { %v638_v15 = vadd.f32 %v637_v13, %v2367_v37 }
 0x24a   :  { %2030 = vtanh.f32 %v638_v15 }
 0x24b   :  { %2032 = vrcp.f32 %v589_v38 }
 0x254   :  { %v2031_v39 = vpop.eup %2030 }
 0x255   :  { %v641_v40 = vrot.slane %v2031_v39, 2  ;;  %v2033_v43 = vpop.eup %2032 }
 0x257   :  { %v643_v41 = vsub.f32 %v2370_v45, %v641_v40 }
 0x259   :  { %v645_v42 = vrot.slane %v643_v41, 6 }
 0x25b   :  { %v647_v44 = vmul.f32 %v2033_v43, %v645_v42 }
 0x25d   :  { %v2414_v46 = vadd.f32 %v2031_v39, %v647_v44 }
 0x25f   :  { %v649_v47 = vpack.c.bf16 %v2414_v46, %v2414_v46 }
 0x261   :  { %v651_v48 = vrot.slane %v649_v47, 1 }
 0x263   :  { %686 = vmatmul.mubr.bf16.vlgmr.msra.gmra.mrb[12].mxu0 %v651_v48  ;;  %1743 = vmatmul.mubr.bf16.vlgmr.msra.gmra.mrb[12].mxu1 %v651_v48 }
 0x264   :  { %774 = vmatpush1.bf16.msra.mxu0 %v2219_v9  ;;  %1747 = vmatpush3.bf16.msra.mxu1 %v2239_v18 }
 0x265   :  { %775 = vmatprep.subr.bf16.mxu0 %v2222_v10  ;;  %1748 = vmatprep.subr.bf16.mxu1 %v2159_v0 }
 0x266   :  { %805 = vmatprep.mubr.bf16.mxu0 %v2160_v20  ;;  %1762 = vmatprep.mubr.msk.bf16.mxu1 %vm2161_vm1, %v2159_v0 }
 0x268   :  { %776 = vmatpush1.bf16.msra.mxu0 %v2226_v11  ;;  %1749 = vmatpush3.bf16.msra.mxu1 %v2251_v22 }
 0x269   :  { %777 = vmatprep.subr.bf16.mxu0 %v2230_v14  ;;  %1750 = vmatprep.subr.bf16.mxu1 %v2159_v0 }
 0x26c   :  { %778 = vmatpush1.bf16.msra.mxu0 %v2237_v17  ;;  %1751 = vmatpush3.bf16.msra.mxu1 %v2263_v25 }
 0x26d   :  { %779 = vmatprep.subr.bf16.mxu0 %v2242_v19  ;;  %1752 = vmatprep.subr.bf16.mxu1 %v2159_v0 }
 0x270   :  { %780 = vmatpush1.bf16.msra.mxu0 %v2246_v21  ;;  %1753 = vmatpush3.bf16.msra.mxu1 %v2273_v28 }
 0x271   :  { %781 = vmatprep.subr.bf16.mxu0 %v2254_v23  ;;  %1754 = vmatprep.subr.bf16.mxu1 %v2159_v0 }
 0x274   :  { %782 = vmatpush1.bf16.msra.mxu0 %v2259_v24  ;;  %1755 = vmatpush3.bf16.msra.mxu1 %v2283_v31 }
 0x275   :  { %783 = vmatprep.subr.bf16.mxu0 %v2266_v26  ;;  %1756 = vmatprep.subr.bf16.mxu1 %v2159_v0 }
 0x278   :  { %784 = vmatpush1.bf16.msra.mxu0 %v2270_v27  ;;  %1757 = vmatpush3.bf16.msra.mxu1 %v2293_v34 }
 0x279   :  { %785 = vmatprep.subr.bf16.mxu0 %v2276_v29  ;;  %1758 = vmatprep.subr.bf16.mxu1 %v2159_v0 }
 0x27c   :  { %786 = vmatpush1.bf16.msra.mxu0 %v2280_v30  ;;  %1759 = vmatpush3.bf16.msra.mxu1 %v2299_v35 }
 0x27d   :  { %787 = vmatprep.subr.bf16.mxu0 %v2286_v32  ;;  %1760 = vmatprep.subr.bf16.mxu1 %v2159_v0 }
 0x280   :  { %788 = vmatpush1.bf16.msra.mxu0 %v2290_v33  ;;  %1761 = vmatpush3.bf16.msra.mxu1 %v2305_v36 }
 0x281   :  { %893 = vmatprep.subr.bf16.mxu0 %v2216_v8  ;;  %1766 = vmatprep.subr.bf16.mxu1 %v2159_v0 }
 0x336   :  { %v687_v45 = vpop.f32.mrb[12].mxu0  ;;  %v748_v50 = vpop.f32.mrb[12].mxu1 }
 0x337   :  { %v696_v52 = vrot.slane %v687_v45, 4  ;;  %v689_v54 = vpop.f32.mrb[13].mxu0  ;;  %v1744_v56 = vpop.f32.mrb[13].mxu1  ;;  %v749_v6 = vadd.f32 %v2364_v12, %v748_v50 }
 0x338   :  { %v691_v57 = vpop.f32.mrb[14].mxu0  ;;  %v751_v58 = vpop.f32.mrb[14].mxu1  ;;  %v697_v1 = vrot.slane %v689_v54, 4 }
 0x339   :  { %v700_v59 = vadd.f32 %v696_v52, %v2355_v55  ;;  %v692_v60 = vpop.f32.mrb[15].mxu0  ;;  %v1745_v61 = vpop.f32.mrb[15].mxu1  ;;  %v755_v7 = vrot.slane %v749_v6, 4 }
 0x33a   :  { %v701_v2 = vadd.f32 %v697_v1, %v2358_v62 }
 0x33b   :  { %v1555_v63 = vmul.f32 -1.442695, %v700_v59 }
 0x33c   :  { %v1556_v5 = vmul.f32 -1.442695, %v701_v2 }
 0x33d   :  { %2034 = vpow2.f32 %v1555_v63 }
 0x347   :  { %v2035_v3 = vpop.eup %2034 }
 0x348   :  { %v708_v4 = vadd.f32 1.0, %v2035_v3 }
 0x34a   :  { %2036 = vrcp.f32 %v708_v4 }
 0x34b   :  { %2038 = vpow2.f32 %v1556_v5 }
 0x354   :  { %v2037_v13 = vpop.eup %2036 }
 0x355   :  { %v757_v15 = vmul.f32 %v2037_v13, %v755_v7  ;;  %v2039_v38 = vpop.eup %2038 }
 0x356   :  { %v709_v39 = vadd.f32 1.0, %v2039_v38 }
 0x357   :  { %v758_v16 = vadd.f32 %v757_v15, %v2367_v37 }
 0x359   :  { %2040 = vtanh.f32 %v758_v16 }
 0x35a   :  { %2042 = vrcp.f32 %v709_v39 }
 0x363   :  { %v2041_v40 = vpop.eup %2040 }
 0x364   :  { %v761_v41 = vrot.slane %v2041_v40, 2  ;;  %v2043_v44 = vpop.eup %2042 }
 0x366   :  { %v763_v42 = vsub.f32 %v2414_v46, %v761_v41 }
 0x368   :  { %v765_v43 = vrot.slane %v763_v42, 6 }
 0x36a   :  { %v767_v47 = vmul.f32 %v2043_v44, %v765_v43 }
 0x36c   :  { %v2458_v48 = vadd.f32 %v2041_v40, %v767_v47 }
 0x36e   :  { %v769_v45 = vpack.c.bf16 %v2458_v48, %v2458_v48 }
 0x370   :  { %v771_v50 = vrot.slane %v769_v45, 2 }
 0x372   :  { %806 = vmatmul.mubr.bf16.vlgmr.msra.gmra.mrb[16].mxu0 %v771_v50  ;;  %1763 = vmatmul.mubr.bf16.vlgmr.msra.gmra.mrb[16].mxu1 %v771_v50 }
 0x373   :  { %894 = vmatpush1.bf16.msra.mxu0 %v2219_v9  ;;  %1767 = vmatpush3.bf16.msra.mxu1 %v2239_v18 }
 0x374   :  { %895 = vmatprep.subr.bf16.mxu0 %v2222_v10  ;;  %1768 = vmatprep.subr.bf16.mxu1 %v2159_v0 }
 0x375   :  { %925 = vmatprep.mubr.bf16.mxu0 %v2160_v20  ;;  %1782 = vmatprep.mubr.msk.bf16.mxu1 %vm2161_vm1, %v2159_v0 }
 0x377   :  { %896 = vmatpush1.bf16.msra.mxu0 %v2226_v11  ;;  %1769 = vmatpush3.bf16.msra.mxu1 %v2251_v22 }
 0x378   :  { %897 = vmatprep.subr.bf16.mxu0 %v2230_v14  ;;  %1770 = vmatprep.subr.bf16.mxu1 %v2159_v0 }
 0x37b   :  { %898 = vmatpush1.bf16.msra.mxu0 %v2237_v17  ;;  %1771 = vmatpush3.bf16.msra.mxu1 %v2263_v25 }
 0x37c   :  { %899 = vmatprep.subr.bf16.mxu0 %v2242_v19  ;;  %1772 = vmatprep.subr.bf16.mxu1 %v2159_v0 }
 0x37f   :  { %900 = vmatpush1.bf16.msra.mxu0 %v2246_v21  ;;  %1773 = vmatpush3.bf16.msra.mxu1 %v2273_v28 }
 0x380   :  { %901 = vmatprep.subr.bf16.mxu0 %v2254_v23  ;;  %1774 = vmatprep.subr.bf16.mxu1 %v2159_v0 }
 0x383   :  { %902 = vmatpush1.bf16.msra.mxu0 %v2259_v24  ;;  %1775 = vmatpush3.bf16.msra.mxu1 %v2283_v31 }
 0x384   :  { %903 = vmatprep.subr.bf16.mxu0 %v2266_v26  ;;  %1776 = vmatprep.subr.bf16.mxu1 %v2159_v0 }
 0x387   :  { %904 = vmatpush1.bf16.msra.mxu0 %v2270_v27  ;;  %1777 = vmatpush3.bf16.msra.mxu1 %v2293_v34 }
 0x388   :  { %905 = vmatprep.subr.bf16.mxu0 %v2276_v29  ;;  %1778 = vmatprep.subr.bf16.mxu1 %v2159_v0 }
 0x38b   :  { %906 = vmatpush1.bf16.msra.mxu0 %v2280_v30  ;;  %1779 = vmatpush3.bf16.msra.mxu1 %v2299_v35 }
 0x38c   :  { %907 = vmatprep.subr.bf16.mxu0 %v2286_v32  ;;  %1780 = vmatprep.subr.bf16.mxu1 %v2159_v0 }
 0x38f   :  { %908 = vmatpush1.bf16.msra.mxu0 %v2290_v33  ;;  %1781 = vmatpush3.bf16.msra.mxu1 %v2305_v36 }
 0x390   :  { %1001 = vmatprep.subr.bf16.mxu0 %v2216_v8  ;;  %1786 = vmatprep.subr.bf16.mxu1 %v2159_v0 }
 0x445   :  { %v807_v46 = vpop.f32.mrb[16].mxu0  ;;  %v868_v52 = vpop.f32.mrb[16].mxu1 }
 0x446   :  { %v816_v54 = vrot.slane %v807_v46, 2  ;;  %v809_v56 = vpop.f32.mrb[17].mxu0  ;;  %v1764_v57 = vpop.f32.mrb[17].mxu1  ;;  %v869_v7 = vadd.f32 %v2364_v12, %v868_v52 }
 0x447   :  { %v811_v58 = vpop.f32.mrb[18].mxu0  ;;  %v871_v59 = vpop.f32.mrb[18].mxu1  ;;  %v817_v2 = vrot.slane %v809_v56, 2 }
 0x448   :  { %v820_v60 = vadd.f32 %v816_v54, %v2355_v55  ;;  %v812_v61 = vpop.f32.mrb[19].mxu0  ;;  %v1765_v63 = vpop.f32.mrb[19].mxu1  ;;  %v875_v13 = vrot.slane %v869_v7, 2 }
 0x449   :  { %v821_v3 = vadd.f32 %v817_v2, %v2358_v62 }
 0x44a   :  { %v1557_v1 = vmul.f32 -1.442695, %v820_v60 }
 0x44b   :  { %v1558_v6 = vmul.f32 -1.442695, %v821_v3 }
 0x44c   :  { %2044 = vpow2.f32 %v1557_v1 }
 0x456   :  { %v2045_v4 = vpop.eup %2044 }
 0x457   :  { %v828_v5 = vadd.f32 1.0, %v2045_v4 }
 0x459   :  { %2046 = vrcp.f32 %v828_v5 }
 0x45a   :  { %2048 = vpow2.f32 %v1558_v6 }
 0x463   :  { %v2047_v15 = vpop.eup %2046 }
 0x464   :  { %v877_v16 = vmul.f32 %v2047_v15, %v875_v13  ;;  %v2049_v55 = vpop.eup %2048 }
 0x465   :  { %v829_v39 = vadd.f32 1.0, %v2049_v55 }
 0x466   :  { %v878_v38 = vadd.f32 %v877_v16, %v2367_v37 }
 0x468   :  { %2050 = vtanh.f32 %v878_v38 }
 0x469   :  { %2052 = vrcp.f32 %v829_v39 }
 0x472   :  { %v2051_v40 = vpop.eup %2050 }
 0x473   :  { %v881_v41 = vrot.slane %v2051_v40, 2  ;;  %v2053_v43 = vpop.eup %2052 }
 0x475   :  { %v883_v62 = vsub.f32 %v2458_v48, %v881_v41 }
 0x477   :  { %v885_v42 = vrot.slane %v883_v62, 6 }
 0x479   :  { %v887_v44 = vmul.f32 %v2053_v43, %v885_v42 }
 0x47b   :  { %v2502_v47 = vadd.f32 %v2051_v40, %v887_v44 }
 0x47d   :  { %v889_v45 = vpack.c.bf16 %v2502_v47, %v2502_v47 }
 0x47f   :  { %v891_v50 = vrot.slane %v889_v45, 3 }
 0x481   :  { %926 = vmatmul.mubr.bf16.vlgmr.msra.gmra.mrb[20].mxu0 %v891_v50  ;;  %1783 = vmatmul.mubr.bf16.vlgmr.msra.gmra.mrb[20].mxu1 %v891_v50 }
 0x482   :  { %1002 = vmatpush1.bf16.msra.mxu0 %v2219_v9  ;;  %1787 = vmatpush3.bf16.msra.mxu1 %v2239_v18 }
 0x483   :  { %1003 = vmatprep.subr.bf16.mxu0 %v2222_v10  ;;  %1788 = vmatprep.subr.bf16.mxu1 %v2159_v0 }
 0x484   :  { %1033 = vmatprep.mubr.bf16.mxu0 %v2160_v20  ;;  %1802 = vmatprep.mubr.msk.bf16.mxu1 %vm2161_vm1, %v2159_v0 }
 0x486   :  { %1004 = vmatpush1.bf16.msra.mxu0 %v2226_v11  ;;  %1789 = vmatpush3.bf16.msra.mxu1 %v2251_v22 }
 0x487   :  { %1005 = vmatprep.subr.bf16.mxu0 %v2230_v14  ;;  %1790 = vmatprep.subr.bf16.mxu1 %v2159_v0 }
 0x48a   :  { %1006 = vmatpush1.bf16.msra.mxu0 %v2237_v17  ;;  %1791 = vmatpush3.bf16.msra.mxu1 %v2263_v25 }
 0x48b   :  { %1007 = vmatprep.subr.bf16.mxu0 %v2242_v19  ;;  %1792 = vmatprep.subr.bf16.mxu1 %v2159_v0 }
 0x48e   :  { %1008 = vmatpush1.bf16.msra.mxu0 %v2246_v21  ;;  %1793 = vmatpush3.bf16.msra.mxu1 %v2273_v28 }
 0x48f   :  { %1009 = vmatprep.subr.bf16.mxu0 %v2254_v23  ;;  %1794 = vmatprep.subr.bf16.mxu1 %v2159_v0 }
 0x492   :  { %1010 = vmatpush1.bf16.msra.mxu0 %v2259_v24  ;;  %1795 = vmatpush3.bf16.msra.mxu1 %v2283_v31 }
 0x493   :  { %1011 = vmatprep.subr.bf16.mxu0 %v2266_v26  ;;  %1796 = vmatprep.subr.bf16.mxu1 %v2159_v0 }
 0x496   :  { %1012 = vmatpush1.bf16.msra.mxu0 %v2270_v27  ;;  %1797 = vmatpush3.bf16.msra.mxu1 %v2293_v34 }
 0x497   :  { %1013 = vmatprep.subr.bf16.mxu0 %v2276_v29  ;;  %1798 = vmatprep.subr.bf16.mxu1 %v2159_v0 }
 0x49a   :  { %1014 = vmatpush1.bf16.msra.mxu0 %v2280_v30  ;;  %1799 = vmatpush3.bf16.msra.mxu1 %v2299_v35 }
 0x49b   :  { %1015 = vmatprep.subr.bf16.mxu0 %v2286_v32  ;;  %1800 = vmatprep.subr.bf16.mxu1 %v2159_v0 }
 0x49e   :  { %1016 = vmatpush1.bf16.msra.mxu0 %v2290_v33  ;;  %1801 = vmatpush3.bf16.msra.mxu1 %v2305_v36 }
 0x49f   :  { %1121 = vmatprep.subr.bf16.mxu0 %v2216_v8  ;;  %1806 = vmatprep.subr.bf16.mxu1 %v2159_v0 }
 0x554   :  { %v927_v37 = vpop.f32.mrb[20].mxu0  ;;  %v982_v48 = vpop.f32.mrb[20].mxu1 }
 0x555   :  { %v934_v46 = vadd.f32 %v927_v37, %v2349_v49  ;;  %v929_v52 = vpop.f32.mrb[21].mxu0  ;;  %v1784_v54 = vpop.f32.mrb[21].mxu1  ;;  %v983_v2 = vadd.f32 %v2364_v12, %v982_v48 }
 0x556   :  { %v931_v56 = vpop.f32.mrb[22].mxu0  ;;  %v985_v57 = vpop.f32.mrb[22].mxu1  ;;  %v935_v61 = vadd.f32 %v929_v52, %v2351_v51 }
 0x557   :  { %v1559_v58 = vmul.f32 -1.442695, %v934_v46  ;;  %v932_v59 = vpop.f32.mrb[23].mxu0  ;;  %v1785_v60 = vpop.f32.mrb[23].mxu1 }
 0x558   :  { %v1560_v8 = vmul.f32 -1.442695, %v935_v61 }
 0x559   :  { %2054 = vpow2.f32 %v1559_v58 }
 0x563   :  { %v2055_v63 = vpop.eup %2054 }
 0x564   :  { %v942_v1 = vadd.f32 1.0, %v2055_v63 }
 0x566   :  { %2056 = vrcp.f32 %v942_v1 }
 0x567   :  { %2058 = vpow2.f32 %v1560_v8 }
 0x570   :  { %v2057_v3 = vpop.eup %2056 }
 0x571   :  { %v988_v4 = vmul.f32 %v2057_v3, %v983_v2  ;;  %v2059_v6 = vpop.eup %2058 }
 0x572   :  { %v943_v7 = vadd.f32 1.0, %v2059_v6  ;;  %v2096_v6 = vld [vmem:[#allocation4 + $0x8] ss:$12 sps:$4 sm:$0xff]  }
 0x573   :  { %v989_v5 = vadd.f32 %v988_v4, %v2353_v53 }
 0x575   :  { %2060 = vtanh.f32 %v989_v5  ;;  %v2095_v5 = vld [vmem:[#allocation4] ss:$12 sps:$4 sm:$0xff]  }
 0x576   :  { %2062 = vrcp.f32 %v943_v7  ;;  %v2097_v7 = vld [vmem:[#allocation4 + $0x1c] ss:$12 sps:$4 sm:$0xff]  }
 0x57f   :  { %v2061_v13 = vpop.eup %2060 }
 0x580   :  { %v992_v15 = vrot.slane %v2061_v13, 2  ;;  %v2063_v55 = vpop.eup %2062 }
 0x582   :  { %v994_v16 = vsub.f32 %v2502_v47, %v992_v15  ;;  %v2099_v15 = vld [vmem:[#allocation4 + $0x34] ss:$12 sps:$4 sm:$0xff]  }
 0x584   :  { %v996_v38 = vrot.slane %v994_v16, 6  ;;  %v2100_v16 = vld [vmem:[#allocation4 + $0x30] ss:$12 sps:$4 sm:$0xff]  }
 0x586   :  { %v998_v39 = vmul.f32 %v2063_v55, %v996_v38  ;;  %v2101_v38 = vld [vmem:[#allocation4 + $0x4c] ss:$12 sps:$4 sm:$0xff]   ;;  %v2103_v55 = vld [vmem:[#allocation4 + $0x64] ss:$12 sps:$4 sm:$0xff]  }
 0x588   :  { %v2546_v40 = vadd.f32 %v2061_v13, %v998_v39  ;;  %v2098_v13 = vld [vmem:[#allocation4 + $0x18] ss:$12 sps:$4 sm:$0xff]  }
 0x58a   :  { %v1000_v41 = vpack.c.bf16 %v2546_v40, %v2546_v40 }
 0x58c   :  { %1034 = vmatmul.mubr.bf16.vlgmr.msra.gmra.mrb[24].mxu0 %v1000_v41  ;;  %1803 = vmatmul.mubr.bf16.vlgmr.msra.gmra.mrb[24].mxu1 %v1000_v41 }
 0x58d   :  { %1122 = vmatpush1.bf16.msra.mxu0 %v2219_v9  ;;  %1807 = vmatpush3.bf16.msra.mxu1 %v2239_v18  ;;  %v2094_v9 = vld [vmem:[#allocation4 + $0x4] ss:$12 sps:$4 sm:$0xff]  }
 0x58e   :  { %1123 = vmatprep.subr.bf16.mxu0 %v2222_v10  ;;  %1808 = vmatprep.subr.bf16.mxu1 %v2159_v0 }
 0x58f   :  { %1153 = vmatprep.mubr.bf16.mxu0 %v2160_v20  ;;  %1822 = vmatprep.mubr.msk.bf16.mxu1 %vm2161_vm1, %v2159_v0 }
 0x591   :  { %1124 = vmatpush1.bf16.msra.mxu0 %v2226_v11  ;;  %1809 = vmatpush3.bf16.msra.mxu1 %v2251_v22 }
 0x592   :  { %1125 = vmatprep.subr.bf16.mxu0 %v2230_v14  ;;  %1810 = vmatprep.subr.bf16.mxu1 %v2159_v0 }
 0x595   :  { %1126 = vmatpush1.bf16.msra.mxu0 %v2237_v17  ;;  %1811 = vmatpush3.bf16.msra.mxu1 %v2263_v25 }
 0x596   :  { %1127 = vmatprep.subr.bf16.mxu0 %v2242_v19  ;;  %1812 = vmatprep.subr.bf16.mxu1 %v2159_v0 }
 0x599   :  { %1128 = vmatpush1.bf16.msra.mxu0 %v2246_v21  ;;  %1813 = vmatpush3.bf16.msra.mxu1 %v2273_v28 }
 0x59a   :  { %1129 = vmatprep.subr.bf16.mxu0 %v2254_v23  ;;  %1814 = vmatprep.subr.bf16.mxu1 %v2159_v0 }
 0x59d   :  { %1130 = vmatpush1.bf16.msra.mxu0 %v2259_v24  ;;  %1815 = vmatpush3.bf16.msra.mxu1 %v2283_v31 }
 0x59e   :  { %1131 = vmatprep.subr.bf16.mxu0 %v2266_v26  ;;  %1816 = vmatprep.subr.bf16.mxu1 %v2159_v0 }
 0x5a1   :  { %1132 = vmatpush1.bf16.msra.mxu0 %v2270_v27  ;;  %1817 = vmatpush3.bf16.msra.mxu1 %v2293_v34 }
 0x5a2   :  { %1133 = vmatprep.subr.bf16.mxu0 %v2276_v29  ;;  %1818 = vmatprep.subr.bf16.mxu1 %v2159_v0 }
 0x5a5   :  { %1134 = vmatpush1.bf16.msra.mxu0 %v2280_v30  ;;  %1819 = vmatpush3.bf16.msra.mxu1 %v2299_v35 }
 0x5a6   :  { %1135 = vmatprep.subr.bf16.mxu0 %v2286_v32  ;;  %1820 = vmatprep.subr.bf16.mxu1 %v2159_v0 }
 0x5a9   :  { %1136 = vmatpush1.bf16.msra.mxu0 %v2290_v33  ;;  %1821 = vmatpush3.bf16.msra.mxu1 %v2305_v36 }
 0x5aa   :  { %1241 = vmatprep.subr.bf16.mxu0 %v2094_v9  ;;  %1826 = vmatprep.subr.bf16.mxu1 %v2159_v0 }
 0x65f   :  { %v1035_v10 = vpop.f32.mrb[24].mxu0  ;;  %v1096_v11 = vpop.f32.mrb[24].mxu1 }
 0x660   :  { %v1044_v14 = vrot.slane %v1035_v10, 6  ;;  %v1037_v17 = vpop.f32.mrb[25].mxu0  ;;  %v1804_v18 = vpop.f32.mrb[25].mxu1  ;;  %v1097_v48 = vadd.f32 %v2364_v12, %v1096_v11 }
 0x661   :  { %v1039_v19 = vpop.f32.mrb[26].mxu0  ;;  %v1099_v21 = vpop.f32.mrb[26].mxu1  ;;  %v1045_v44 = vrot.slane %v1037_v17, 6 }
 0x662   :  { %v1048_v23 = vadd.f32 %v1044_v14, %v2349_v49  ;;  %v1040_v62 = vpop.f32.mrb[27].mxu0  ;;  %v1805_v42 = vpop.f32.mrb[27].mxu1  ;;  %v1103_v46 = vrot.slane %v1097_v48, 6  ;;  %v2162_v48 = vmov 0.0|0.0  }
 0x663   :  { %v1049_v47 = vadd.f32 %v1045_v44, %v2351_v51 }
 0x664   :  { %v1561_v43 = vmul.f32 -1.442695, %v1048_v23 }
 0x665   :  { %v1562_v37 = vmul.f32 -1.442695, %v1049_v47 }
 0x666   :  { %2064 = vpow2.f32 %v1561_v43 }
 0x670   :  { %v2065_v45 = vpop.eup %2064 }
 0x671   :  { %v1056_v50 = vadd.f32 1.0, %v2065_v45  ;;  %v52_v45 = vld [vmem:[#allocation2 + $0x30] sm:$0xff] }
 0x673   :  { %2066 = vrcp.f32 %v1056_v50  ;;  %v53_v50 = vld [vmem:[#allocation2 + $0x48] sm:$0xff] }
 0x674   :  { %2068 = vpow2.f32 %v1562_v37  ;;  %v1925_v37 = vpack.c.bf16 %v53_v50, %v52_v45 }
 0x67d   :  { %v2067_v52 = vpop.eup %2066 }
 0x67e   :  { %v1105_v54 = vmul.f32 %v2067_v52, %v1103_v46  ;;  %v2069_v57 = vpop.eup %2068  ;;  %v54_v46 = vld [vmem:[#allocation2 + $0x60] sm:$0xff]  ;;  %v55_v52 = vld [vmem:[#allocation2 + $0x78] sm:$0xff] }
 0x67f   :  { %v1057_v58 = vadd.f32 1.0, %v2069_v57  ;;  %v57_v57 = vld [vmem:[#allocation2 + $0xa8] sm:$0xff] }
 0x680   :  { %v1106_v56 = vadd.f32 %v1105_v54, %v2353_v53  ;;  %v1928_v54 = vpack.c.bf16 %v55_v52, %v54_v46 }
 0x682   :  { %2070 = vtanh.f32 %v1106_v56  ;;  %v56_v56 = vld [vmem:[#allocation2 + $0x90] sm:$0xff] }
 0x683   :  { %2072 = vrcp.f32 %v1057_v58  ;;  %v58_v58 = vld [vmem:[#allocation2 + $0xc0] sm:$0xff] }
 0x68c   :  { %v2071_v59 = vpop.eup %2070 }
 0x68d   :  { %v1109_v60 = vrot.slane %v2071_v59, 2  ;;  %v2073_v1 = vpop.eup %2072 }
 0x68f   :  { %v1111_v61 = vsub.f32 %v2546_v40, %v1109_v60 }
 0x691   :  { %v1113_v63 = vrot.slane %v1111_v61, 6  ;;  %v60_v61 = vld [vmem:[#allocation2 + $0xf0] sm:$0xff] }
 0x693   :  { %v1115_v8 = vmul.f32 %v2073_v1, %v1113_v63  ;;  %v61_v63 = vld [vmem:[#allocation2 + $0x108] sm:$0xff] }
 0x694   :  { %v1937_v1 = vpack.c.bf16 %v61_v63, %v60_v61 }
 0x695   :  { %v2589_v2 = vadd.f32 %v2071_v59, %v1115_v8  ;;  %v59_v59 = vld [vmem:[#allocation2 + $0xd8] sm:$0xff]  ;;  %v62_v8 = vld [vmem:[#allocation2 + $0x120] sm:$0xff] }
 0x696   :  { %v1934_v60 = vpack.c.bf16 %v59_v59, %v58_v58 }
 0x697   :  { %v1117_v3 = vpack.c.bf16 %v2589_v2, %v2589_v2 }
 0x699   :  { %v1119_v4 = vrot.slane %v1117_v3, 1 }
 0x69b   :  { %1154 = vmatmul.mubr.bf16.vlgmr.msra.gmra.mrb[28].mxu0 %v1119_v4  ;;  %1823 = vmatmul.mubr.bf16.vlgmr.msra.gmra.mrb[28].mxu1 %v1119_v4  ;;  %v64_v4 = vld [vmem:[#allocation2 + $0x150] sm:$0xff] }
 0x69c   :  { %1242 = vmatpush1.bf16.msra.mxu0 %v2095_v5  ;;  %1827 = vmatpush3.bf16.msra.mxu1 %v2096_v6  ;;  %v65_v5 = vld [vmem:[#allocation2 + $0x168] sm:$0xff] }
 0x69d   :  { %1243 = vmatprep.subr.bf16.mxu0 %v2097_v7  ;;  %1828 = vmatprep.subr.bf16.mxu1 %v2159_v0  ;;  %v1943_v6 = vpack.c.bf16 %v65_v5, %v64_v4  ;;  %v66_v7 = vld [vmem:[#allocation2 + $0x180] sm:$0xff] }
 0x69e   :  { %1273 = vmatprep.mubr.bf16.mxu0 %v2160_v20  ;;  %1842 = vmatprep.mubr.msk.bf16.mxu1 %vm2161_vm1, %v2159_v0  ;;  %v2102_v20 = vld [vmem:[#allocation4 + $0x48] ss:$12 sps:$4 sm:$0xff]  }
 0x6a0   :  { %1244 = vmatpush1.bf16.msra.mxu0 %v2098_v13  ;;  %1829 = vmatpush3.bf16.msra.mxu1 %v2251_v22  ;;  %v67_v13 = vld [vmem:[#allocation2 + $0x198] sm:$0xff] }
 0x6a1   :  { %1245 = vmatprep.subr.bf16.mxu0 %v2099_v15  ;;  %1830 = vmatprep.subr.bf16.mxu1 %v2159_v0  ;;  %v1946_v15 = vpack.c.bf16 %v67_v13, %v66_v7 }
 0x6a4   :  { %1246 = vmatpush1.bf16.msra.mxu0 %v2100_v16  ;;  %1831 = vmatpush3.bf16.msra.mxu1 %v2263_v25  ;;  %v68_v16 = vld [vmem:[#allocation2 + $0x1b0] sm:$0xff] }
 0x6a5   :  { %1247 = vmatprep.subr.bf16.mxu0 %v2101_v38  ;;  %1832 = vmatprep.subr.bf16.mxu1 %v2159_v0  ;;  %v69_v38 = vld [vmem:[#allocation2 + $0x1c8] sm:$0xff] }
 0x6a8   :  { %1248 = vmatpush1.bf16.msra.mxu0 %v2102_v20  ;;  %1833 = vmatpush3.bf16.msra.mxu1 %v2273_v28  ;;  %v70_v20 = vld [vmem:[#allocation2 + $0x1e0] sm:$0xff] }
 0x6a9   :  { %1249 = vmatprep.subr.bf16.mxu0 %v2103_v55  ;;  %1834 = vmatprep.subr.bf16.mxu1 %v2159_v0  ;;  %v1949_v55 = vpack.c.bf16 %v69_v38, %v68_v16 }
 0x6ac   :  { %1250 = vmatpush1.bf16.msra.mxu0 %v2259_v24  ;;  %1835 = vmatpush3.bf16.msra.mxu1 %v2283_v31 }
 0x6ad   :  { %1251 = vmatprep.subr.bf16.mxu0 %v2266_v26  ;;  %1836 = vmatprep.subr.bf16.mxu1 %v2159_v0 }
 0x6b0   :  { %1252 = vmatpush1.bf16.msra.mxu0 %v2270_v27  ;;  %1837 = vmatpush3.bf16.msra.mxu1 %v2293_v34 }
 0x6b1   :  { %1253 = vmatprep.subr.bf16.mxu0 %v2276_v29  ;;  %1838 = vmatprep.subr.bf16.mxu1 %v2159_v0 }
 0x6b4   :  { %1254 = vmatpush1.bf16.msra.mxu0 %v2280_v30  ;;  %1839 = vmatpush3.bf16.msra.mxu1 %v2299_v35 }
 0x6b5   :  { %1255 = vmatprep.subr.bf16.mxu0 %v2286_v32  ;;  %1840 = vmatprep.subr.bf16.mxu1 %v2159_v0 }
 0x6b8   :  { %1256 = vmatpush1.bf16.msra.mxu0 %v2290_v33  ;;  %1841 = vmatpush3.bf16.msra.mxu1 %v2305_v36 }
 0x6b9   :  { %1924 = vmatprep.subr.bf16.mxu0 %v2162_v48  ;;  %1948 = vmatprep.subr.bf16.mxu1 %v2162_v48 }
 0x76e   :  { %v1155_v22 = vpop.f32.mrb[28].mxu0  ;;  %v1216_v24 = vpop.f32.mrb[28].mxu1 }
 0x76f   :  { %v1164_v25 = vrot.slane %v1155_v22, 4  ;;  %v1157_v26 = vpop.f32.mrb[29].mxu0  ;;  %v1824_v27 = vpop.f32.mrb[29].mxu1  ;;  %v1217_v41 = vadd.f32 %v2364_v12, %v1216_v24  ;;  %v71_v22 = vld [vmem:[#allocation2 + $0x1f8] sm:$0xff] }
 0x770   :  { %v1159_v28 = vpop.f32.mrb[30].mxu0  ;;  %v1219_v29 = vpop.f32.mrb[30].mxu1  ;;  %v1165_v32 = vrot.slane %v1157_v26, 4  ;;  %v1952_v24 = vpack.c.bf16 %v71_v22, %v70_v20  ;;  %v73_v26 = vld [vmem:[#allocation2 + $0x228] sm:$0xff] }
 0x771   :  { %v1168_v31 = vadd.f32 %v1164_v25, %v2349_v49  ;;  %v1160_v30 = vpop.f32.mrb[31].mxu0  ;;  %v1825_v34 = vpop.f32.mrb[31].mxu1  ;;  %v1223_v9 = vrot.slane %v1217_v41, 4  ;;  %v72_v25 = vld [vmem:[#allocation2 + $0x210] sm:$0xff]  ;;  %v74_v28 = vld [vmem:[#allocation2 + $0x240] sm:$0xff]  ;;  %v75_v29 = vld [vmem:[#allocation2 + $0x258] sm:$0xff] }
 0x772   :  { %v1169_v39 = vadd.f32 %v1165_v32, %v2351_v51  ;;  %v1955_v27 = vpack.c.bf16 %v73_v26, %v72_v25  ;;  %v76_v30 = vld [vmem:[#allocation2 + $0x270] sm:$0xff]  ;;  %v77_v34 = vld [vmem:[#allocation2 + $0x288] sm:$0xff]  ;;  %v78_v32 = vld [vmem:[#allocation2 + $0x2a0] sm:$0xff] }
 0x773   :  { %v1563_v35 = vmul.f32 -1.442695, %v1168_v31  ;;  %v1958_v31 = vpack.c.bf16 %v75_v29, %v74_v28 }
 0x774   :  { %v1564_v36 = vmul.f32 -1.442695, %v1169_v39  ;;  %v79_v39 = vld [vmem:[#allocation2 + $0x2b8] sm:$0xff] }
 0x775   :  { %2074 = vpow2.f32 %v1563_v35  ;;  %v1961_v35 = vpack.c.bf16 %v77_v34, %v76_v30 }
 0x77f   :  { %v2075_v40 = vpop.eup %2074 }
 0x780   :  { %v1176_v33 = vadd.f32 1.0, %v2075_v40  ;;  %v1964_v40 = vpack.c.bf16 %v79_v39, %v78_v32 }
 0x782   :  { %2076 = vrcp.f32 %v1176_v33  ;;  %v80_v33 = vld [vmem:[#allocation2 + $0x2d0] sm:$0xff] }
 0x783   :  { %2078 = vpow2.f32 %v1564_v36  ;;  %v81_v36 = vld [vmem:[#allocation2 + $0x2e8] sm:$0xff] }
 0x784   :  { %v1967_v41 = vpack.c.bf16 %v81_v36, %v80_v33 }
 0x78c   :  { %v2077_v10 = vpop.eup %2076 }
 0x78d   :  { %v1225_v11 = vmul.f32 %v2077_v10, %v1223_v9  ;;  %v2079_v17 = vpop.eup %2078 }
 0x78e   :  { %v1177_v18 = vadd.f32 1.0, %v2079_v17 }
 0x78f   :  { %v1226_v14 = vadd.f32 %v1225_v11, %v2353_v53 }
 0x791   :  { %2080 = vtanh.f32 %v1226_v14 }
 0x792   :  { %2082 = vrcp.f32 %v1177_v18 }
 0x79b   :  { %v2081_v19 = vpop.eup %2080 }
 0x79c   :  { %v1229_v21 = vrot.slane %v2081_v19, 2  ;;  %v2083_v42 = vpop.eup %2082 }
 0x79e   :  { %v1231_v23 = vsub.f32 %v2589_v2, %v1229_v21  ;;  %v63_v2 = vld [vmem:[#allocation2 + $0x138] sm:$0xff] }
 0x79f   :  { %v1940_v3 = vpack.c.bf16 %v63_v2, %v62_v8  ;;  %v82_v8 = vld [vmem:[#allocation2 + $0x300] sm:$0xff]  ;;  %v83_v2 = vld [vmem:[#allocation2 + $0x318] sm:$0xff] }
 0x7a0   :  { %v1233_v62 = vrot.slane %v1231_v23, 6 }
 0x7a2   :  { %v1235_v43 = vmul.f32 %v2083_v42, %v1233_v62 }
 0x7a4   :  { %v2622_v44 = vadd.f32 %v2081_v19, %v1235_v43 }
 0x7a6   :  { %v1237_v12 = vpack.c.bf16 %v2622_v44, %v2622_v44 }
 0x7a8   :  { %v1239_v47 = vrot.slane %v1237_v12, 2 }
 0x7aa   :  { %1274 = vmatmul.mubr.bf16.vlgmr.msra.gmra.mrb[32].mxu0 %v1239_v47  ;;  %1843 = vmatmul.mubr.bf16.vlgmr.msra.gmra.mrb[32].mxu1 %v1239_v47 }
 0x7ab   :  { %1878 = vmatprep.mubr.msk.f32.mxu0 %vm2161_vm1, %v2159_v0  ;;  %1913 = vmatprep.mubr.msk.f32.mxu1 %vm2161_vm1, %v2159_v0  ;;  %v1931_v0 = vpack.c.bf16 %v57_v57, %v56_v56 }
 0x7ac   :  { %1926 = vmatpush3.bf16.msra.mxu0 %v1925_v37  ;;  %1950 = vmatpush3.bf16.msra.mxu1 %v1949_v55  ;;  %v2104_v37 = vld [vmem:[%s2665_s3 + $0x3] ss:$0 sm:$0xff] }
 0x7ad   :  { %1927 = vmatprep.subr.bf16.mxu0 %v2162_v48  ;;  %1951 = vmatprep.subr.bf16.mxu1 %v2162_v48 }
 0x7b0   :  { %1929 = vmatpush3.bf16.msra.mxu0 %v1928_v54  ;;  %1953 = vmatpush3.bf16.msra.mxu1 %v1952_v24 }
 0x7b1   :  { %1930 = vmatprep.subr.bf16.mxu0 %v2162_v48  ;;  %1954 = vmatprep.subr.bf16.mxu1 %v2162_v48 }
 0x7b4   :  { %1932 = vmatpush3.bf16.msra.mxu0 %v1931_v0  ;;  %1956 = vmatpush3.bf16.msra.mxu1 %v1955_v27 }
 0x7b5   :  { %1933 = vmatprep.subr.bf16.mxu0 %v2162_v48  ;;  %1957 = vmatprep.subr.bf16.mxu1 %v2162_v48 }
 0x7b8   :  { %1935 = vmatpush3.bf16.msra.mxu0 %v1934_v60  ;;  %1959 = vmatpush3.bf16.msra.mxu1 %v1958_v31 }
 0x7b9   :  { %1936 = vmatprep.subr.bf16.mxu0 %v2162_v48  ;;  %1960 = vmatprep.subr.bf16.mxu1 %v2162_v48 }
 0x7bc   :  { %1938 = vmatpush3.bf16.msra.mxu0 %v1937_v1  ;;  %1962 = vmatpush3.bf16.msra.mxu1 %v1961_v35 }
 0x7bd   :  { %1939 = vmatprep.subr.bf16.mxu0 %v2162_v48  ;;  %1963 = vmatprep.subr.bf16.mxu1 %v2162_v48 }
 0x7c0   :  { %1941 = vmatpush3.bf16.msra.mxu0 %v1940_v3  ;;  %1965 = vmatpush3.bf16.msra.mxu1 %v1964_v40  ;;  %v1970_v3 = vpack.c.bf16 %v83_v2, %v82_v8 }
 0x7c1   :  { %1942 = vmatprep.subr.bf16.mxu0 %v2162_v48  ;;  %1966 = vmatprep.subr.bf16.mxu1 %v2162_v48 }
 0x7c4   :  { %1944 = vmatpush3.bf16.msra.mxu0 %v1943_v6  ;;  %1968 = vmatpush3.bf16.msra.mxu1 %v1967_v41 }
 0x7c5   :  { %1945 = vmatprep.subr.bf16.mxu0 %v2162_v48  ;;  %1969 = vmatprep.subr.bf16.mxu1 %v2162_v48 }
 0x7c8   :  { %1947 = vmatpush3.bf16.msra.mxu0 %v1946_v15  ;;  %1971 = vmatpush3.bf16.msra.mxu1 %v1970_v3 }
 0x87d   :  { %v1275_v9 = vpop.f32.mrb[32].mxu0  ;;  %v1336_v10 = vpop.f32.mrb[32].mxu1 }
 0x87e   :  { %v1284_v11 = vrot.slane %v1275_v9, 2  ;;  %v1277_v14 = vpop.f32.mrb[33].mxu0  ;;  %v1844_v17 = vpop.f32.mrb[33].mxu1  ;;  %v1337_v48 = vadd.f32 %v2104_v37, %v1336_v10 }
 0x87f   :  { %v1279_v18 = vpop.f32.mrb[34].mxu0  ;;  %v1339_v19 = vpop.f32.mrb[34].mxu1  ;;  %v1285_v43 = vrot.slane %v1277_v14, 2 }
 0x880   :  { %v1288_v21 = vadd.f32 %v1284_v11, %v2349_v49  ;;  %v1280_v23 = vpop.f32.mrb[35].mxu0  ;;  %v1845_v62 = vpop.f32.mrb[35].mxu1  ;;  %v1343_v46 = vrot.slane %v1337_v48, 2 }
 0x881   :  { %v1289_v12 = vadd.f32 %v1285_v43, %v2351_v51 }
 0x882   :  { %v1565_v42 = vmul.f32 -1.442695, %v1288_v21 }
 0x883   :  { %v1566_v50 = vmul.f32 -1.442695, %v1289_v12 }
 0x884   :  { %2084 = vpow2.f32 %v1565_v42 }
 0x88e   :  { %v2085_v47 = vpop.eup %2084 }
 0x88f   :  { %v1296_v45 = vadd.f32 1.0, %v2085_v47 }
 0x891   :  { %2086 = vrcp.f32 %v1296_v45 }
 0x892   :  { %2088 = vpow2.f32 %v1566_v50 }
 0x89b   :  { %v2087_v52 = vpop.eup %2086 }
 0x89c   :  { %v1345_v49 = vmul.f32 %v2087_v52, %v1343_v46  ;;  %v2089_v56 = vpop.eup %2088 }
 0x89d   :  { %v1297_v57 = vadd.f32 1.0, %v2089_v56 }
 0x89e   :  { %v1346_v54 = vadd.f32 %v1345_v49, %v2353_v53  ;;  %v1567_v53 = vld [vmem:[%s2665_s3 + $0x4] ss:$0 sm:$0xff] }
 0x8a0   :  { %2090 = vtanh.f32 %v1346_v54 }
 0x8a1   :  { %2092 = vrcp.f32 %v1297_v57 }
 0x8aa   :  { %v2091_v51 = vpop.eup %2090 }
 0x8ab   :  { %v1349_v0 = vrot.slane %v2091_v51, 2  ;;  %v2093_v60 = vpop.eup %2092 }
 0x8ad   :  { %v1351_v58 = vsub.f32 %v2622_v44, %v1349_v0  ;;  %v1568_v44 = vld [vmem:[%s2665_s3 + $0x5] ss:$0 sm:$0xff] }
 0x8af   :  { %v1353_v59 = vrot.slane %v1351_v58, 6 }
 0x8b1   :  { %v1355_v61 = vmul.f32 %v2093_v60, %v1353_v59 }
 0x8b3   :  { %v1356_v63 = vadd.f32 %v2091_v51, %v1355_v61 }
 0x8b5   :  { %v1364_v1 = vrot.slane %v1356_v63, 6 }
 0x8b7   :  { %1879 = vmatmul.mubr.f32.vlgmr.msra.gmra.mrb[36].mxu0 %v1364_v1 }
 0x98a   :  { %v1432_v4 = vpop.f32.mrb[36].mxu0 }
 0x98b   :  { %v1433_v5 = vadd.f32 %v1567_v53, %v1432_v4  ;;  %v1880_v6 = vpop.f32.mrb[37].mxu0 }
 0x98d   :  { %v1436_v7 = vmax.f32 %v1433_v5, 0.0 }
 0x98f   :  { %1914 = vmatmul.mubr.f32.vlgmr.msra.gmra.mrb[2].mxu1 %v1436_v7 }
 0xa62   :  { %v1503_v13 = vpop.f32.mrb[2].mxu1 }
 0xa63   :  { %v1513_v15 = vadd.f32 %v1568_v44, %v1503_v13  ;;  %v1915_v16 = vpop.f32.mrb[3].mxu1 }
 0xa65   :  { %1515 = vst.msk [vmem:[%s2666_s4] sm:$0x3] %vm1514_vm2, %v1513_v15 }
 0xa66   :  { %1520 = vsyncpa [#allocation3], 1 }
 0xa67   :  { %1521 = vsyncpa [#allocation5], 1 }

</bundles_post_ra>
